<compile_context>
chip_gen: v7x
topology: tpu7x:2x2x1
jax: 0.10.0
libtpu: 0.0.40
codegen_flags: <defaults>
</compile_context>

<pallas_src>
import functools

import jax
import jax.numpy as jnp
from jax import lax
from jax.experimental import pallas as pl
from jax.experimental.pallas import tpu as pltpu


def attention_kernel(pre_h_ref, att_seq_ref, wa_ref, wh_ref, bhba_ref, wo_ref,
                     z_ref, *, n_valid):
    tb, n, f = att_seq_ref.shape
    h = wa_ref.shape[1]

    att3 = att_seq_ref[...]                            # (TB, N, F) compute dtype
    att2 = att3.reshape(tb * n, f)                      # (TB*N, F) -- layout no-op (N % 8 == 0)

    # att_2_att_h : one wide MXU matmul over the whole batch tile (f32 accumulation).
    att_lin = jnp.dot(att2, wa_ref[...],
                      preferred_element_type=jnp.float32)                      # (TB*N, H)

    # h_2_att_h : batched over TB; ba is pre-folded into this bias on the host,
    # so no (TB*N, H) broadcast-add on the big intermediate.
    h_lin = jnp.dot(pre_h_ref[...], wh_ref[...],
                    preferred_element_type=jnp.float32) + bhba_ref[...]         # (TB, H)

    # tanh kept in f32 (EUP).
    att_h = jnp.tanh(att_lin.reshape(tb, n, h) + h_lin[:, None, :])             # (TB, N, H)

    # att_h_2_out as a VPU multiply + lane reduce instead of a degenerate
    # (TB*N,H)@(H,1) MXU matmul + (TB*N,1)->(TB,N) relayout.  The scalar output
    # bias bo adds the same constant to every score in a row, so it cancels
    # under softmax and is omitted.
    scores = jnp.sum(att_h * wo_ref[...][None], axis=-1)                        # (TB, N) f32

    if n != n_valid:   # mask host-padded att positions (compile-time branch)
        col = lax.broadcasted_iota(jnp.int32, (tb, n), 1)
        scores = jnp.where(col < n_valid, scores, -1e30)

    # softmax over att_num (f32); denominator reciprocal goes to the EUP slot.
    m = jnp.max(scores, axis=-1, keepdims=True)
    e = jnp.exp(scores - m)
    denom = jnp.sum(e, axis=-1, keepdims=True)
    w = e * pl.reciprocal(denom, approx=True)                                   # (TB, N)

    # z = bmm(att_seq^T, w) as a VPU weighted sum with f32 accumulation, instead
    # of TB tiny (1,N)@(N,F) MXU passes through the result FIFO.
    z = jnp.sum(att3.astype(jnp.float32) * w[:, :, None], axis=1)               # (TB, F)
    z_ref[...] = z.astype(z_ref.dtype)


def _vmem_capacity_bytes():
    try:
        info = pltpu.get_tpu_info()
        return int(getattr(info, "vmem_capacity_bytes", 64 << 20))
    except Exception:
        return 64 << 20   # v7x-safe fallback (64 MiB physical per TensorCore)


def _choose_tb(B, N, F_, R, H, cds, vmem_budget):
    """Pick the batch tile: big enough to fill MXU rows / amortize per-step
    overhead, small enough for VMEM (incl. the f32 intermediates), >= 2 grid
    steps for v7x, and preferably dividing B so no wrapper pad copy is needed."""
    # Target TB*N ~ 1024 MXU rows (not just 128) -> ~MiB-scale per-step DMAs.
    tb = max(8, 8 * pl.cdiv(pl.cdiv(1024, N), 8))
    # VMEM per batch row of the tile: double-buffered input block, the f32
    # intermediates (att_lin, att_h, f32 att copy), h_lin, and the output block.
    per_row = (2 * N * F_ * cds          # double-buffered att_seq block
               + N * F_ * 4              # f32 att block for the weighted sum
               + 2 * N * H * 4           # att_lin + att_h (f32)
               + 2 * R * cds + H * 4     # pre_h block + h_lin
               + 2 * F_ * 4              # double-buffered output block
               + 8 * N * 4)              # scores / softmax temporaries
    fixed = 2 * (F_ * H + R * H) * cds + 4 * H * 4 + (256 << 10)
    cap = max(8, ((vmem_budget - fixed) // per_row) // 8 * 8)
    tb = min(tb, cap)
    # Keep >= 2 grid steps so dimension_semantics=("parallel",) can shard the
    # grid across both v7x TensorCores (harmless on single-TC v5e/v6e).
    if B >= 16:
        tb = min(tb, max(8, (B // 2) // 8 * 8))
    tb = max(8, min(tb, 8 * pl.cdiv(B, 8)))
    # Prefer a tb that divides B exactly (avoids an extra HBM copy of att_seq).
    for cand in range(tb, 7, -8):
        if B % cand == 0:
            return cand
    return tb


def attention_model_core(pre_h, att_seq, params, *, tb=None,
                         compute_dtype=jnp.float32):
    """Pallas wrapper reproducing AttentionModelCore.forward."""
    wa, ba, wh, bh, wo, bo = params
    del bo  # scalar output bias: constant per softmax row, cancels exactly
    B, N, F_ = att_seq.shape
    R = pre_h.shape[1]
    H = wa.shape[1]

    cds = jnp.dtype(compute_dtype).itemsize
    vmem_cap = _vmem_capacity_bytes()            # generation-aware (64 vs 128 MiB)

    if tb is None:
        tb = _choose_tb(B, N, F_, R, H, cds, vmem_cap // 2)
    tb = max(8, 8 * pl.cdiv(tb, 8))              # sublane-align the batch tile
    tb = min(tb, 8 * pl.cdiv(B, 8))

    # Pad att_num to a sublane multiple so the in-kernel (TB,N,F)<->(TB*N,F)
    # reshapes stay layout no-ops; padded positions are masked before softmax.
    n_valid = N
    Np = 8 * pl.cdiv(N, 8)
    if Np != N:
        att_seq = jnp.pad(att_seq, ((0, 0), (0, Np - N), (0, 0)))

    # Pad the batch only if no tb dividing B was found (rare; costs an HBM copy).
    Bp = tb * pl.cdiv(B, tb)
    if Bp != B:
        pre_h = jnp.pad(pre_h, ((0, Bp - B), (0, 0)))
        att_seq = jnp.pad(att_seq, ((0, Bp - B), (0, 0), (0, 0)))

    # Cast the HBM-dominant operands at the pallas_call boundary (bf16 halves
    # att_seq traffic and removes per-step in-kernel casts); biases and the
    # scores row stay f32 so tanh / softmax / accumulation remain f32.
    pre_h_c = pre_h.astype(compute_dtype)
    att_seq_c = att_seq.astype(compute_dtype)
    wa_c = wa.astype(compute_dtype)
    wh_c = wh.astype(compute_dtype)
    bhba = (bh + ba).astype(jnp.float32)         # fold ba into the small (TB,H) path
    wo_f = wo.astype(jnp.float32)                # lane-dense (1, H) row, used on the VPU

    kernel = functools.partial(attention_kernel, n_valid=n_valid)

    z = pl.pallas_call(
        kernel,
        out_shape=jax.ShapeDtypeStruct((Bp, F_), jnp.float32),
        grid_spec=pltpu.PrefetchScalarGridSpec(
            num_scalar_prefetch=0,
            grid=(Bp // tb,),
            in_specs=[
                pl.BlockSpec((tb, R), lambda b: (b, 0)),          # pre_h
                pl.BlockSpec((tb, Np, F_), lambda b: (b, 0, 0)),  # att_seq
                pl.BlockSpec((F_, H), lambda b: (0, 0)),          # att_2_att_h weight (in,out)
                pl.BlockSpec((R, H), lambda b: (0, 0)),           # h_2_att_h weight (in,out)
                pl.BlockSpec((1, H), lambda b: (0, 0)),           # bh + ba (f32)
                pl.BlockSpec((1, H), lambda b: (0, 0)),           # att_h_2_out weight row (f32)
            ],
            out_specs=pl.BlockSpec((tb, F_), lambda b: (b, 0)),   # lane-dense (TB, F) slab
        ),
        compiler_params=pltpu.CompilerParams(
            dimension_semantics=("parallel",),                    # shards across v7x TCs
            vmem_limit_bytes=int(vmem_cap * 3 // 4)),
    )(pre_h_c, att_seq_c, wa_c, wh_c, bhba, wo_f)

    # PyTorch .squeeze() on (B, F, 1); for B > 1 the result is (B, F).
    # TODO(synk): PyTorch's .squeeze() returns shape (F,) when B == 1; this
    # wrapper always returns (B, F).
    return z[:B]


def init_params(key, rnn_size, att_feat_size, att_hid_size):
    """Deterministic uniform(-0.1, 0.1) init, matching the module's __init__."""
    initrange = 0.1
    ks = jax.random.split(key, 6)
    wa = jax.random.uniform(ks[0], (att_feat_size, att_hid_size), jnp.float32,
                            -initrange, initrange)
    ba = jax.random.uniform(ks[1], (1, att_hid_size), jnp.float32, -initrange, initrange)
    wh = jax.random.uniform(ks[2], (rnn_size, att_hid_size), jnp.float32,
                            -initrange, initrange)
    bh = jax.random.uniform(ks[3], (1, att_hid_size), jnp.float32, -initrange, initrange)
    wo = jax.random.uniform(ks[4], (1, att_hid_size), jnp.float32, -initrange, initrange)
    bo = jax.random.uniform(ks[5], (1, 1), jnp.float32, -initrange, initrange)
    return (wa, ba, wh, bh, wo, bo)


def reference_forward(pre_h, att_seq, params):
    """Pure-JAX reference matching the PyTorch forward."""
    wa, ba, wh, bh, wo, bo = params
    att_lin = jnp.einsum('bnf,fh->bnh', att_seq, wa) + ba          # (B, N, H)
    h_lin = pre_h @ wh + bh                                        # (B, H)
    att_h = jnp.tanh(h_lin[:, None, :] + att_lin)                  # (B, N, H)
    scores = jnp.einsum('bnh,h->bn', att_h, wo[0]) + bo[0, 0]      # (B, N)
    w = jax.nn.softmax(scores, axis=-1)                            # (B, N)
    z = jnp.einsum('bnf,bn->bf', att_seq, w)                       # (B, F)
    return z


if __name__ == "__main__":
    # Small shapes; TB is auto-chosen to 16 here so the grid has 2 steps (both
    # v7x TensorCores get work) and TB divides B (no wrapper pad copy).
    B = 32
    rnn_size = 64
    att_feat_size = 128
    att_num = 8
    att_hid_size = 128

    key = jax.random.PRNGKey(0)
    kp, k1, k2 = jax.random.split(key, 3)
    params = init_params(kp, rnn_size, att_feat_size, att_hid_size)

    pre_h = jax.random.normal(k1, (B, rnn_size), jnp.float32)
    att_seq = jax.random.normal(k2, (B, att_num, att_feat_size), jnp.float32)

    z_ref = reference_forward(pre_h, att_seq, params)

    # f32 path: parity with the PyTorch forward up to the approx-reciprocal
    # softmax (~1e-4 relative).
    z = jax.block_until_ready(attention_model_core(pre_h, att_seq, params))
    assert z.shape == (B, att_feat_size)
    assert jnp.allclose(z, z_ref, atol=5e-3, rtol=5e-3)

    # bf16-at-the-boundary path (f32 tanh/softmax/accumulation).  Recommended on
    # all generations: the kernel is HBM-bound, so halving att_seq bytes is the
    # dominant win, and the MXU is bf16-native on v5e as well as v6e/v7x.
    z_bf16 = jax.block_until_ready(
        attention_model_core(pre_h, att_seq, params, compute_dtype=jnp.bfloat16))
    assert jnp.allclose(z_bf16, z_ref, atol=5e-2, rtol=5e-2)

    print("KERNEL_OK")
</pallas_src>

<mosaic_0001>
module attributes {stable_mosaic.version = 11 : i64} {
  func.func @attention_kernel(%arg0: i32, %arg1: memref<16x64xf32, #tpu.memory_space<vmem>>, %arg2: memref<16x8x128xf32, #tpu.memory_space<vmem>>, %arg3: memref<128x128xf32, #tpu.memory_space<vmem>>, %arg4: memref<64x128xf32, #tpu.memory_space<vmem>>, %arg5: memref<1x128xf32, #tpu.memory_space<vmem>>, %arg6: memref<1x128xf32, #tpu.memory_space<vmem>>, %arg7: memref<16x128xf32, #tpu.memory_space<vmem>>) attributes {dimension_semantics = [#tpu.dimension_semantics<parallel>], iteration_bounds = array<i64: 2>, scalar_prefetch = 0 : i64, scratch_operands = 0 : i64, tpu.core_type = #tpu.core_type<tc>, window_params = [{transform_indices = @transform_0, window_bounds = array<i64: 16, 64>}, {transform_indices = @transform_1, window_bounds = array<i64: 16, 8, 128>}, {pipeline_mode = #tpu.pipeline_mode<synchronous>, transform_indices = @transform_2, window_bounds = array<i64: 128, 128>}, {pipeline_mode = #tpu.pipeline_mode<synchronous>, transform_indices = @transform_3, window_bounds = array<i64: 64, 128>}, {pipeline_mode = #tpu.pipeline_mode<synchronous>, transform_indices = @transform_4, window_bounds = array<i64: 1, 128>}, {pipeline_mode = #tpu.pipeline_mode<synchronous>, transform_indices = @transform_5, window_bounds = array<i64: 1, 128>}, {transform_indices = @transform_6, window_bounds = array<i64: 16, 128>}]} {
    %c0 = arith.constant 0 : index
    %c0_0 = arith.constant 0 : index
    %c0_1 = arith.constant 0 : index
    %0 = vector.load %arg2[%c0, %c0_0, %c0_1] : memref<16x8x128xf32, #tpu.memory_space<vmem>>, vector<16x8x128xf32>
    %1 = vector.shape_cast %0 : vector<16x8x128xf32> to vector<128x128xf32>
    %c0_2 = arith.constant 0 : index
    %c0_3 = arith.constant 0 : index
    %2 = vector.load %arg3[%c0_2, %c0_3] : memref<128x128xf32, #tpu.memory_space<vmem>>, vector<128x128xf32>
    %cst = arith.constant dense<0.000000e+00> : vector<128x128xf32>
    %3 = tpu.matmul %1, %2, %cst {dimension_numbers = #tpu.dot_dimension_numbers<[1], [0], [0], [1], [0, 0, 1, 1], [], []>} : vector<128x128xf32>, vector<128x128xf32>, vector<128x128xf32> -> vector<128x128xf32>
    %c0_4 = arith.constant 0 : index
    %c0_5 = arith.constant 0 : index
    %4 = vector.load %arg1[%c0_4, %c0_5] : memref<16x64xf32, #tpu.memory_space<vmem>>, vector<16x64xf32>
    %c0_6 = arith.constant 0 : index
    %c0_7 = arith.constant 0 : index
    %5 = vector.load %arg4[%c0_6, %c0_7] : memref<64x128xf32, #tpu.memory_space<vmem>>, vector<64x128xf32>
    %cst_8 = arith.constant dense<0.000000e+00> : vector<16x128xf32>
    %6 = tpu.matmul %4, %5, %cst_8 {dimension_numbers = #tpu.dot_dimension_numbers<[1], [0], [0], [1], [0, 0, 1, 1], [], []>} : vector<16x64xf32>, vector<64x128xf32>, vector<16x128xf32> -> vector<16x128xf32>
    %c0_9 = arith.constant 0 : index
    %c0_10 = arith.constant 0 : index
    %7 = vector.load %arg5[%c0_9, %c0_10] : memref<1x128xf32, #tpu.memory_space<vmem>>, vector<1x128xf32>
    %8 = vector.broadcast %7 : vector<1x128xf32> to vector<16x128xf32>
    %9 = arith.addf %6, %8 : vector<16x128xf32>
    %10 = vector.shape_cast %3 : vector<128x128xf32> to vector<16x8x128xf32>
    %11 = vector.shape_cast %9 : vector<16x128xf32> to vector<16x1x128xf32>
    %12 = vector.broadcast %11 : vector<16x1x128xf32> to vector<16x8x128xf32>
    %13 = arith.addf %10, %12 : vector<16x8x128xf32>
    %14 = math.tanh %13 : vector<16x8x128xf32>
    %c0_11 = arith.constant 0 : index
    %c0_12 = arith.constant 0 : index
    %15 = vector.load %arg6[%c0_11, %c0_12] : memref<1x128xf32, #tpu.memory_space<vmem>>, vector<1x128xf32>
    %16 = vector.shape_cast %15 : vector<1x128xf32> to vector<1x1x128xf32>
    %17 = vector.broadcast %16 : vector<1x1x128xf32> to vector<16x8x128xf32>
    %18 = arith.mulf %14, %17 : vector<16x8x128xf32>
    %cst_13 = arith.constant dense<0.000000e+00> : vector<16x8xf32>
    %19 = vector.multi_reduction <add>, %18, %cst_13 [2] : vector<16x8x128xf32> to vector<16x8xf32>
    %cst_14 = arith.constant dense<0xFF800000> : vector<16xf32>
    %20 = vector.multi_reduction <maximumf>, %19, %cst_14 [1] : vector<16x8xf32> to vector<16xf32>
    %21 = vector.shape_cast %20 : vector<16xf32> to vector<16x1xf32>
    %22 = vector.broadcast %21 : vector<16x1xf32> to vector<16x8xf32>
    %23 = arith.subf %19, %22 : vector<16x8xf32>
    %24 = math.exp %23 : vector<16x8xf32>
    %cst_15 = arith.constant dense<0.000000e+00> : vector<16xf32>
    %25 = vector.multi_reduction <add>, %24, %cst_15 [1] : vector<16x8xf32> to vector<16xf32>
    %26 = vector.shape_cast %25 : vector<16xf32> to vector<16x1xf32>
    %27 = tpu.reciprocal %26 {approx = true} : vector<16x1xf32> -> vector<16x1xf32>
    %28 = vector.broadcast %27 : vector<16x1xf32> to vector<16x8xf32>
    %29 = arith.mulf %24, %28 : vector<16x8xf32>
    %30 = vector.shape_cast %29 : vector<16x8xf32> to vector<16x8x1xf32>
    %31 = vector.broadcast %30 : vector<16x8x1xf32> to vector<16x8x128xf32>
    %32 = arith.mulf %0, %31 : vector<16x8x128xf32>
    %cst_16 = arith.constant dense<0.000000e+00> : vector<16x128xf32>
    %33 = vector.multi_reduction <add>, %32, %cst_16 [1] : vector<16x8x128xf32> to vector<16x128xf32>
    %c0_17 = arith.constant 0 : index
    %c0_18 = arith.constant 0 : index
    %34 = vector.load %arg7[%c0_17, %c0_18] : memref<16x128xf32, #tpu.memory_space<vmem>>, vector<16x128xf32>
    tpu.vector_store %arg7[%c0_17, %c0_18], %33 {strides = array<i32>} : memref<16x128xf32, #tpu.memory_space<vmem>>, vector<16x128xf32>,
    return
  }
  func.func @transform_0(%arg0: i32) -> (i32, i32) {
    %c0_i32 = arith.constant 0 : i32
    %c0_i32_0 = arith.constant 0 : i32
    return %arg0, %c0_i32 : i32, i32
  }
  func.func @transform_1(%arg0: i32) -> (i32, i32, i32) {
    %c0_i32 = arith.constant 0 : i32
    %c0_i32_0 = arith.constant 0 : i32
    %c0_i32_1 = arith.constant 0 : i32
    return %arg0, %c0_i32, %c0_i32_0 : i32, i32, i32
  }
  func.func @transform_2(%arg0: i32) -> (i32, i32) {
    %c0_i32 = arith.constant 0 : i32
    %c0_i32_0 = arith.constant 0 : i32
    %c0_i32_1 = arith.constant 0 : i32
    return %c0_i32, %c0_i32_0 : i32, i32
  }
  func.func @transform_3(%arg0: i32) -> (i32, i32) {
    %c0_i32 = arith.constant 0 : i32
    %c0_i32_0 = arith.constant 0 : i32
    %c0_i32_1 = arith.constant 0 : i32
    return %c0_i32, %c0_i32_0 : i32, i32
  }
  func.func @transform_4(%arg0: i32) -> (i32, i32) {
    %c0_i32 = arith.constant 0 : i32
    %c0_i32_0 = arith.constant 0 : i32
    %c0_i32_1 = arith.constant 0 : i32
    return %c0_i32, %c0_i32_0 : i32, i32
  }
  func.func @transform_5(%arg0: i32) -> (i32, i32) {
    %c0_i32 = arith.constant 0 : i32
    %c0_i32_0 = arith.constant 0 : i32
    %c0_i32_1 = arith.constant 0 : i32
    return %c0_i32, %c0_i32_0 : i32, i32
  }
  func.func @transform_6(%arg0: i32) -> (i32, i32) {
    %c0_i32 = arith.constant 0 : i32
    %c0_i32_0 = arith.constant 0 : i32
    return %arg0, %c0_i32 : i32, i32
  }
}

</mosaic_0001>

<bundles_post_ra>
// kernel: tpu_custom_call.1
= control target key start
LH: loop header
LB: loop body
LE: loop exit
PB: predicated region body
PF: predicated region fallthrough
CT: control target
= control target key end

     0   :  { %s3034_s0 = inlined_call_operand.hbm [shape: f32[32,64], index: 0, kind: input, shape index: {}]   ;;  %s3035_s1 = inlined_call_operand.hbm [shape: f32[32,8,128], index: 1, kind: input, shape index: {}]   ;;  %s3036_s2 = inlined_call_operand.hbm [shape: f32[128,128], index: 2, kind: input, shape index: {}]   ;;  %s3037_s3 = inlined_call_operand.hbm [shape: f32[64,128], index: 3, kind: input, shape index: {}]   ;;  %s3038_s4 = inlined_call_operand.vmem [shape: f32[1,128], index: 4, kind: input, shape index: {}]   ;;  %s3039_s5 = inlined_call_operand.vmem [shape: f32[1,128], index: 5, kind: input, shape index: {}]   ;;  %s3040_s6 = inlined_call_operand.hbm [shape: f32[32,128], index: 6, kind: output, shape index: {}]  }
   0x1   :  { %3048 = sst [smem:[#allocation17_spill]] %s3034_s0 }
   0x2   :  { %3049 = sst [smem:[#allocation18_spill]] %s3036_s2 }
   0x3   :  { %3050 = sst [smem:[#allocation19_spill]] %s3037_s3 }
   0x4   :  { %11 = vsyncpa [#allocation3], 0 }
   0x5   :  { %13 = vsyncpa [#allocation3 + $0x1], 0 }
   0x6   :  { %14 = vsyncpa [#allocation6], 0 }
   0x7   :  { %16 = vsyncpa [#allocation6 + $0x1], 0 }
   0x8   :  { %17 = vsyncpa [#allocation9], 0 }
   0x9   :  { %18 = vsyncpa [#allocation4], 0 }
   0xa   :  { %20 = vsyncpa [#allocation4 + $0x1], 0  ;;  %s2319_s21 = smov 0   ;;  %s2321_s22 = smov 0  }
   0xb   :  { %s2323_s23 = smov 0   ;;  %s2325_s24 = smov 0  }
   0xc LB: > { %s2340_s25 = sadd.s32 4294967295, %s2271_s24   ;;  %s1732_s26 = sadd.s32 4294967294, %s2271_s24   ;;  %s2271_s24 = sphi %s2325_s24, %s3077_s24   ;;  %s2267_s23 = sphi %s2323_s23, %s3076_s23   ;;  %s2263_s22 = sphi %s2321_s22, %s3075_s22   ;;  %s2259_s21 = sphi %s2319_s21, %s3074_s21  }
   0xd   : > { %p46_p0 = scmp.ne.s32.totalorder %s2263_s22, %s2259_s21  ;;  %p3041_p1 = scmp.eq.s32.totalorder %s2340_s25, 0 }
   0xe   : > { %p186_p3 = scmp.eq.s32.totalorder %s1732_s26, 1  ;;  %p1733_p5 = scmp.ge.s32.totalorder %s2271_s24, 1 }
   0xf   : > { %p2349_p4 = por %p3041_p1, %p46_p0  ;;  %p193_p7 = scmp.lt.s32.totalorder %s2271_s24, 3 }
  0x10   : > { %p2354_p6 = por %p186_p3, %p46_p0  ;;  %s2273_s30 = smov [#allocation7]  }
  0x11   : > { %s3051_s27 = scalar_select %p2349_p4, 1, 0 }
  0x12   : > { %s3052_s28 = scalar_select %p2354_p6, 1, 0 }
  0x13   : > { %p2359_p8 = pnand %p1733_p5, %p193_p7  ;;  %s205_s7 = sshll.u32 %s2273_s30, 4  ;;  %s2363_s7 = int_to_ptr.vmem [resolvable:$true] %s205_s7 }
  0x14   : > { %s2274_s9 = smov [#allocation8]   ;;  %s3055_s2 = sld [smem:[#allocation18_spill]] }
  0x15   : > { %p1940_p9 = pneg %p2359_p8  ;;  %s218_s10 = sshll.u32 %s2274_s9, 4  ;;  %s2374_s10 = int_to_ptr.vmem [resolvable:$true] %s218_s10 }
  0x17   : > { %p2370_p11 = pnand %p1940_p9, %p3041_p1 }
  0x19   : > { %p2079_p13 = pneg %p2370_p11 }
  0x1a   : > { %s2077_s13 = scalar_lea.hbm %s3055_s2, 2048 }
  0x1b   : > { %p2078_p12 = scmp.ne.s32.totalorder %s3055_s2, %s2077_s13  ;;  %p2084_p5 = scmp.lt.u32.totalorder %s2077_s13, %s3055_s2 }
  0x1d   : > { %p2080_p0 = pnand %p2079_p13, %p2078_p12 }
  0x1f   : > { %p2081_p3 = pneg %p2080_p0 }
  0x21   : > { %p2086_p7 = pnand %p2084_p5, %p2081_p3 }
  0x23   : > { %2089 = shalt.err (!%p2086_p7)
}
  0x24   : > { %s2090_s18 = scalar_lea.vmem %s2363_s7, 2048  ;;  %p2098_p2 = scmp.lt.s32.totalorder %s2363_s7, %s2363_s7 }
  0x25   : > { %p2091_p9 = scmp.ne.s32.totalorder %s2363_s7, %s2090_s18  ;;  %p2099_p12 = scmp.lt.s32.totalorder %s2090_s18, %s2090_s18 }
  0x27   : > { %p2093_p10 = pnand %p2091_p9, %p2079_p13  ;;  %p2100_p0 = por %p2099_p12, %p2098_p2 }
  0x29   : > { %p2094_p1 = pneg %p2093_p10 }
  0x2b   : > { %p2101_p6 = pnand %p2100_p0, %p2094_p1 }
  0x2d   : > { %2104 = shalt.err (!%p2101_p6)
}
  0x2e   : > { %s3042_s19 = smov 128   ;;  %s3044_s20 = smov 8  }
  0x2f   : > { %1943 = dma.hbm_to_vmem [thread:$0]  (!%p2370_p11), %s3055_s2, 2048, %s2363_s7, [#allocation6], %s3042_s19, %s3042_s19, %s3044_s20  }
  0x30   : > { %s3056_s3 = sld [smem:[#allocation19_spill]] }
  0x36   : > { %s2105_s12 = scalar_lea.hbm %s3056_s3, 1024 }
  0x37   : > { %p2106_p1 = scmp.ne.s32.totalorder %s3056_s3, %s2105_s12  ;;  %p2112_p10 = scmp.lt.u32.totalorder %s2105_s12, %s3056_s3 }
  0x39   : > { %p2108_p2 = pnand %p2106_p1, %p2079_p13 }
  0x3b   : > { %p2109_p6 = pneg %p2108_p2 }
  0x3d   : > { %p2114_p3 = pnand %p2112_p10, %p2109_p6 }
  0x3f   : > { %2117 = shalt.err (!%p2114_p3)
}
  0x40   : > { %s2118_s7 = scalar_lea.vmem %s2374_s10, 1024  ;;  %p2126_p12 = scmp.lt.s32.totalorder %s2374_s10, %s2374_s10 }
  0x41   : > { %p2119_p5 = scmp.ne.s32.totalorder %s2374_s10, %s2118_s7  ;;  %p2127_p0 = scmp.lt.s32.totalorder %s2118_s7, %s2118_s7 }
  0x43   : > { %p2121_p7 = pnand %p2119_p5, %p2079_p13  ;;  %p2128_p1 = por %p2127_p0, %p2126_p12 }
  0x45   : > { %p2122_p9 = pneg %p2121_p7 }
  0x47   : > { %p2129_p2 = pnand %p2128_p1, %p2122_p9 }
  0x49   : > { %2132 = shalt.err (!%p2129_p2)
}
  0x4a   : > { %1946 = dma.hbm_to_vmem [thread:$0]  (!%p2370_p11), %s3056_s3, 1024, %s2374_s10, [#allocation9], %s3042_s19, %s3042_s19, %s3044_s20  }
  0x4b   : > { %s2435_s8 = sadd.s32 1, %s2271_s24   ;;  %s33_s26 = sadd.s32 1, %s2267_s23 }
  0x4c   : > { %s30_s30 = ssub.s32 %s2271_s24, %s2435_s8  ;;  %p40_p13 = scmp.ne.s32.totalorder %s2267_s23, %s2263_s22 }
  0x4d   : > { %p31_p6 = scmp.eq.s32.totalorder %s30_s30, 0  ;;  %p41_p10 = scmp.eq.s32.totalorder %s2271_s24, 0 }
  0x4e   : > { %p3057_p3 = scmp.eq.s32.totalorder %s2340_s25, 1  ;;  %p1960_p7 = scmp.lt.s32.totalorder %s2271_s24, 2 }
  0x4f   : > { %s2451_s11 = scalar_select %p31_p6, %s2267_s23, %s33_s26  }
  0x50   : > { %p2445_p5 = por %p3057_p3, %p40_p13  ;;  %p42_p9 = por %p41_p10, %p40_p13 }
  0x51   : > { %3059 = sst [smem:[#allocation16_spill]] %s2451_s11  ;;  %s2454_s12 = sand.u32 1, %s2267_s23  }
  0x52   : > { %s3058_s9 = scalar_select %p2445_p5, 1, 0 }
  0x53   : > { %s1737_s10 = sshll.u32 %s2454_s12, 4  ;;  %s1758_s13 = sshll.u32 %s2271_s24, 8 }
  0x54   : > { %s3060_s0 = sld [smem:[#allocation17_spill]]  ;;  %s242_s7 = scalar_lea.vmem [#allocation2], %s1737_s10 }
  0x55   : > { %s249_s17 = sshll.u32 %s242_s7, 4  ;;  %p2465_p11 = pnand %p1960_p7, %p42_p9  ;;  %s2463_s17 = int_to_ptr.vmem [resolvable:$true] %s249_s17 }
  0x56   : > { %s1740_s30 = sshll.u32 %s2454_s12, 7  ;;  %s239_s19 = scalar_lea.sflag [#allocation3], %s2454_s12 }
  0x57   : > { %p2135_p0 = pneg %p2465_p11 }
  0x5a   : > { %s2461_s16 = scalar_lea.hbm %s3060_s0, %s1758_s13  ;;  %s2138_s15 = scalar_lea.hbm %s3060_s0, 512 }
  0x5b   : > { %s2133_s14 = scalar_lea.hbm %s2461_s16, 256  ;;  %p2139_p13 = scmp.lt.u32.totalorder %s2461_s16, %s3060_s0 }
  0x5c   : > { %p2134_p12 = scmp.ne.s32.totalorder %s2461_s16, %s2133_s14  ;;  %p2140_p6 = scmp.lt.u32.totalorder %s2138_s15, %s2133_s14 }
  0x5d   : > { %p2142_p3 = scmp.lt.u32.totalorder %s2133_s14, %s2461_s16 }
  0x5e   : > { %p2136_p1 = pnand %p2135_p0, %p2134_p12  ;;  %p2141_p10 = por %p2140_p6, %p2139_p13 }
  0x60   : > { %p2137_p2 = pneg %p2136_p1  ;;  %p2143_p7 = por %p2142_p3, %p2141_p10 }
  0x62   : > { %p2144_p9 = pnand %p2143_p7, %p2137_p2 }
  0x64   : > { %2147 = shalt.err (!%p2144_p9)
}
  0x65   : > { %s2148_s26 = scalar_lea.vmem %s2463_s17, 256  ;;  %s2277_s10 = smov [#allocation2]  }
  0x66   : > { %p2149_p12 = scmp.ne.s32.totalorder %s2463_s17, %s2148_s26  ;;  %s2153_s13 = sshll.u32 %s2277_s10, 4  ;;  %s2154_s13 = int_to_ptr.vmem [resolvable:$false] %s2153_s13 }
  0x67   : > { %s2155_s20 = scalar_lea.vmem %s2154_s13, 512  ;;  %p2156_p4 = scmp.lt.s32.totalorder %s2463_s17, %s2154_s13 }
  0x68   : > { %p2151_p1 = pnand %p2149_p12, %p2135_p0  ;;  %p2157_p13 = scmp.lt.s32.totalorder %s2155_s20, %s2148_s26 }
  0x6a   : > { %p2152_p5 = pneg %p2151_p1  ;;  %p2158_p6 = por %p2157_p13, %p2156_p4 }
  0x6c   : > { %p2159_p10 = pnand %p2158_p6, %p2152_p5 }
  0x6e   : > { %2162 = shalt.err (!%p2159_p10)
}
  0x6f   : > { %s3062_s14 = smov 8   ;;  %s3063_s15 = smov 128  }
  0x70   : > { %1950 = dma.hbm_to_vmem [thread:$0]  (!%p2465_p11), %s2461_s16, 256, %s2463_s17, %s239_s19, %s3063_s15, %s3063_s15, %s3062_s14  }
  0x71   : > { %s1759_s7 = sshll.u32 %s2271_s24, 11  ;;  %s263_s20 = scalar_lea.vmem [#allocation5], %s1740_s30 }
  0x72   : > { %s2506_s13 = scalar_lea.hbm %s3035_s1, %s1759_s7  ;;  %s270_s0 = sshll.u32 %s263_s20, 4  ;;  %s2510_s0 = int_to_ptr.vmem [resolvable:$true] %s270_s0 }
  0x73   : > { %s3064_s2 = sand.u32 1, %s2271_s24   ;;  %s2163_s11 = scalar_lea.hbm %s2506_s13, 2048 }
  0x74   : > { %s2514_s3 = scalar_lea.sflag [#allocation6], %s3064_s2  ;;  %p2164_p4 = scmp.ne.s32.totalorder %s2506_s13, %s2163_s11 }
  0x75   : > { %s2168_s12 = scalar_lea.hbm %s3035_s1, 4096  ;;  %p2169_p3 = scmp.lt.u32.totalorder %s2506_s13, %s3035_s1 }
  0x76   : > { %p2166_p5 = pnand %p2164_p4, %p2135_p0  ;;  %p2170_p7 = scmp.lt.u32.totalorder %s2168_s12, %s2163_s11 }
  0x77   : > { %p2172_p12 = scmp.lt.u32.totalorder %s2163_s11, %s2506_s13 }
  0x78   : > { %p2167_p2 = pneg %p2166_p5  ;;  %p2171_p9 = por %p2170_p7, %p2169_p3 }
  0x7a   : > { %p2173_p1 = por %p2172_p12, %p2171_p9 }
  0x7c   : > { %p2174_p13 = pnand %p2173_p1, %p2167_p2 }
  0x7e   : > { %2177 = shalt.err (!%p2174_p13)
}
  0x7f   : > { %s2178_s2 = scalar_lea.vmem %s2510_s0, 2048  ;;  %s2278_s30 = smov [#allocation5]  }
  0x80   : > { %p2179_p6 = scmp.ne.s32.totalorder %s2510_s0, %s2178_s2  ;;  %s2183_s10 = sshll.u32 %s2278_s30, 4  ;;  %s2184_s10 = int_to_ptr.vmem [resolvable:$false] %s2183_s10 }
  0x81   : > { %s2185_s26 = scalar_lea.vmem %s2184_s10, 4096  ;;  %p2186_p5 = scmp.lt.s32.totalorder %s2510_s0, %s2184_s10 }
  0x82   : > { %p2181_p10 = pnand %p2179_p6, %p2135_p0  ;;  %p2187_p3 = scmp.lt.s32.totalorder %s2185_s26, %s2178_s2 }
  0x84   : > { %p2182_p4 = pneg %p2181_p10  ;;  %p2188_p7 = por %p2187_p3, %p2186_p5 }
  0x86   : > { %p2189_p9 = pnand %p2188_p7, %p2182_p4 }
  0x88   : > { %2192 = shalt.err (!%p2189_p9)
}
  0x89   : > { %1953 = dma.hbm_to_vmem [thread:$0]  (!%p2465_p11), %s2506_s13, 2048, %s2510_s0, %s2514_s3, %s3063_s15, %s3063_s15, %s3062_s14  }
  0x8a   : > { %282 = sbr.rel (%p2359_p8) target bundleno = 1268 (0x4f4), region = 44  ;;  %s2546_s11 = sand.u32 (!%p2359_p8), 1, %s2263_s22  }
  0x8b   : > { %s1744_s20 = sshll.u32 (!%p2359_p8), %s2546_s11, 4  ;;  %s285_s19 = scalar_lea.sflag (!%p2359_p8), [#allocation3], %s2546_s11 }
  0x8c   : > { %s2552_s18 = scalar_lea.vmem (!%p2359_p8), [#allocation2], %s1744_s20  ;;  %p3065_p0 = scmp.ne.s32.totalorder (!%p2359_p8), %s3051_s27, 0 }
  0x91   : > { %2238 = dma.done.wait (%p3065_p0), %s285_s19, 256  }
  0x92   : > { %2240 = vsyncadd (%p3065_p0), %s285_s19, 4294967040  ;;  %s293_s0 = sand.u32 1, %s2340_s25   ;;  %s1745_s3 = sshll.u32 %s2546_s11, 7 }
  0x93   : > { %s294_s29 = scalar_lea.sflag [#allocation6], %s293_s0  ;;  %s2560_s14 = scalar_lea.vmem [#allocation5], %s1745_s3 }
  0x94   : > { %2242 = dma.done.wait (%p3065_p0), %s294_s29, 2048  }
  0x95   : > { %2244 = vsyncadd (%p3065_p0), %s294_s29, 4294965248  ;;  %p3066_p8 = scmp.eq.s32.totalorder %s2340_s25, 0 }
  0x97   : > { %2246 = dma.done.wait (%p3066_p8), [#allocation6], 2048   ;;  %p3067_p11 = pmov %p3066_p8 }
  0x98   : > { %p3068_p2 = pmov %p3066_p8 }
  0x99   : > { %2248 = vsyncadd (%p3067_p11), [#allocation6], 4294965248 }
  0x9a   : > { %2250 = dma.done.wait (%p3068_p2), [#allocation9], 1024   ;;  %p3069_p12 = pmov %p3068_p2 }
  0x9b   : > { %v358_v0 = vld [vmem:[#allocation7] sm:$0xff]  ;;  %v359_v1 = vld [vmem:[#allocation7 + $0x8] sm:$0xff]  ;;  %v360_v2 = vld [vmem:[#allocation7 + $0x10] sm:$0xff]  ;;  %vm536_vm0 = vcmask 523264   ;;  %v2279_v54 = vmov 1966171168   ;;  %v624_v56 = vlaneseq }
  0x9c   : > { %2252 = vsyncadd (%p3069_p12), [#allocation9], 4294966272  ;;  %v1878_v3 = vpack.c.bf16 %v359_v1, %v358_v0  ;;  %v361_v4 = vld [vmem:[#allocation7 + $0x18] sm:$0xff]  ;;  %v521_v5 = vld [vmem:[#allocation8] sm:$0xff]  ;;  %v622_v55 = vunpack.c.l.s4 %v2279_v54  ;;  %vm967_vm1 = vcmask 1041409   ;;  %vm969_vm2 = vcmask 1042434  }
  0x9d   : > { %v522_v6 = vld [vmem:[#allocation8 + $0x8] sm:$0xff]  ;;  %v1882_v7 = vpack.c.bf16 %v361_v4, %v360_v2  ;;  %v362_v9 = vld [vmem:[#allocation7 + $0x20] sm:$0xff]  ;;  %v523_v11 = vld [vmem:[#allocation8 + $0x10] sm:$0xff]  ;;  %v2634_v58 = vshrl.u32 %v624_v56, 7  ;;  %vm971_vm3 = vcmask 1043459   ;;  %vm973_vm4 = vcmask 1044484  }
  0x9e   : > { %v1910_v8 = vpack.c.bf16 %v522_v6, %v521_v5  ;;  %v363_v10 = vld [vmem:[#allocation7 + $0x28] sm:$0xff]  ;;  %1879 = vmatprep.subr.bf16.mxu0 %v1878_v3  ;;  %v524_v12 = vld [vmem:[#allocation8 + $0x18] sm:$0xff]  ;;  %v525_v14 = vld [vmem:[#allocation8 + $0x20] sm:$0xff]  ;;  %v623_v57 = vunpack.c.0.s8 %v622_v55  ;;  %vm975_vm5 = vcmask 1045509   ;;  %vm977_vm6 = vcmask 1046534   ;;  %s1760_s12 = sshll.u32 %s2340_s25, 8 }
  0x9f   : > { %1881 = vmatpush3.bf16.msra.mxu0 %v1878_v3  ;;  %v1914_v13 = vpack.c.bf16 %v524_v12, %v523_v11  ;;  %v526_v15 = vld [vmem:[#allocation8 + $0x28] sm:$0xff]  ;;  %v1886_v16 = vpack.c.bf16 %v363_v10, %v362_v9  ;;  %v364_v17 = vld [vmem:[#allocation7 + $0x30] sm:$0xff]  ;;  %v365_v18 = vld [vmem:[#allocation7 + $0x38] sm:$0xff]  ;;  %v2646_v5 = vsub.s32 0, %v2634_v58  ;;  %vm979_vm7 = vcmask 1047559   ;;  %s338_s17 = scalar_lea.vmem [#allocation10], %s1744_s20  ;;  %s2985_s25 = scalar_lea.hbm %s3040_s6, %s1760_s12 }
  0xa0   : > { %1911 = vmatprep.subr.bf16.mxu1 %v1910_v8  ;;  %1883 = vmatprep.subr.bf16.mxu0 %v1882_v7  ;;  %v1918_v19 = vpack.c.bf16 %v526_v15, %v525_v14  ;;  %v519_v20 = vld [vmem:[%s2552_s18] sm:$0xff]  ;;  %v528_v22 = vld [vmem:[#allocation8 + $0x38] sm:$0xff]  ;;  %v1890_v24 = vpack.c.bf16 %v365_v18, %v364_v17  ;;  %v367_v26 = vld [vmem:[#allocation7 + $0x48] sm:$0xff]  ;;  %v2640_v61 = vsub.s32 %v623_v57, %v2634_v58  ;;  %vm990_vm8 = vcmask 64512   ;;  %s1617_s7 = sshll.u32 %s338_s17, 4  ;;  %s1604_s10 = scalar_lea.sflag [#allocation4], %s2546_s11  ;;  %s2987_s7 = int_to_ptr.vmem [resolvable:$true] %s1617_s7 }
  0xa1   : > { %1913 = vmatpush3.bf16.msra.mxu1 %v1910_v8  ;;  %v527_v21 = vld [vmem:[#allocation8 + $0x30] sm:$0xff]  ;;  %1875 = vmatprep.mubr.msk.f32.mxu1 %vm536_vm0, %v519_v20  ;;  %v2577_v23 = vld [vmem:[%s2560_s14] sm:$0xff]  ;;  %v369_v30 = vld [vmem:[#allocation7 + $0x58] sm:$0xff]  ;;  %s2193_s26 = scalar_lea.vmem %s2987_s7, 256  ;;  %p3070_p13 = scmp.ne.s32.totalorder %s3058_s9, 0 }
  0xa2   : > { %1915 = vmatprep.subr.bf16.mxu1 %v1914_v13  ;;  %v366_v25 = vld [vmem:[#allocation7 + $0x40] sm:$0xff]  ;;  %v1922_v27 = vpack.c.bf16 %v528_v22, %v527_v21  ;;  %1835 = vmatprep.mubr.f32.mxu0 %v2577_v23  ;;  %v368_v29 = vld [vmem:[#allocation7 + $0x50] sm:$0xff]  ;;  %v520_v32 = vld [vmem:[%s2552_s18 + $0x8] sm:$0xff]  ;;  %p2194_p1 = scmp.ne.s32.totalorder %s2987_s7, %s2193_s26  ;;  %s2281_s20 = smov [#allocation10]  }
  0xa3   : > { %1885 = vmatpush3.bf16.msra.mxu0 %v1882_v7  ;;  %v1894_v28 = vpack.c.bf16 %v367_v26, %v366_v25  ;;  %v1898_v31 = vpack.c.bf16 %v369_v30, %v368_v29  ;;  %v370_v33 = vld [vmem:[#allocation7 + $0x60] sm:$0xff]  ;;  %v371_v34 = vld [vmem:[#allocation7 + $0x68] sm:$0xff]  ;;  %v372_v36 = vld [vmem:[#allocation7 + $0x70] sm:$0xff]  ;;  %s2197_s19 = sshll.u32 %s2281_s20, 4  ;;  %s2198_s19 = int_to_ptr.vmem [resolvable:$false] %s2197_s19 }
  0xa4   : > { %1887 = vmatprep.subr.bf16.mxu0 %v1886_v16  ;;  %v1902_v35 = vpack.c.bf16 %v371_v34, %v370_v33  ;;  %v373_v37 = vld [vmem:[#allocation7 + $0x78] sm:$0xff]  ;;  %v2583_v39 = vld [vmem:[%s2560_s14 + $0x8] sm:$0xff]  ;;  %v2586_v40 = vld [vmem:[%s2560_s14 + $0x10] sm:$0xff]  ;;  %p2195_p6 = pnand %p2194_p1, %p3070_p13  ;;  %s2199_s18 = scalar_lea.vmem %s2198_s19, 512 }
  0xa5   : > { %1917 = vmatpush3.bf16.msra.mxu1 %v1914_v13  ;;  %v1906_v38 = vpack.c.bf16 %v373_v37, %v372_v36  ;;  %v2591_v41 = vld [vmem:[%s2560_s14 + $0x18] sm:$0xff]  ;;  %v2594_v42 = vld [vmem:[%s2560_s14 + $0x20] sm:$0xff]  ;;  %v2599_v43 = vld [vmem:[%s2560_s14 + $0x28] sm:$0xff]  ;;  %p2200_p4 = scmp.lt.s32.totalorder %s2987_s7, %s2198_s19  ;;  %p2201_p5 = scmp.lt.s32.totalorder %s2199_s18, %s2193_s26 }
  0xa6   : > { %1919 = vmatprep.subr.bf16.mxu1 %v1918_v19  ;;  %v348_v44 = vld [vmem:[%s2560_s14 + $0x30] sm:$0xff]  ;;  %v349_v45 = vld [vmem:[%s2560_s14 + $0x38] sm:$0xff]  ;;  %v2605_v46 = vld [vmem:[%s2560_s14 + $0x40] sm:$0xff]  ;;  %p2196_p10 = pneg %p2195_p6 }
  0xa7   : > { %1889 = vmatpush3.bf16.msra.mxu0 %v1886_v16  ;;  %v2609_v47 = vld [vmem:[%s2560_s14 + $0x48] sm:$0xff]  ;;  %v2612_v48 = vld [vmem:[%s2560_s14 + $0x50] sm:$0xff]  ;;  %v2617_v49 = vld [vmem:[%s2560_s14 + $0x58] sm:$0xff]  ;;  %p2202_p3 = por %p2201_p5, %p2200_p4 }
  0xa8   : > { %1891 = vmatprep.subr.bf16.mxu0 %v1890_v24  ;;  %v2620_v50 = vld [vmem:[%s2560_s14 + $0x60] sm:$0xff]  ;;  %v2625_v51 = vld [vmem:[%s2560_s14 + $0x68] sm:$0xff]  ;;  %v2628_v52 = vld [vmem:[%s2560_s14 + $0x70] sm:$0xff] }
  0xa9   : > { %1921 = vmatpush3.bf16.msra.mxu1 %v1918_v19  ;;  %v357_v53 = vld [vmem:[%s2560_s14 + $0x78] sm:$0xff]  ;;  %v1749_v59 = vld [vmem:[%s3038_s4] ss:$0 sm:$0xff]  ;;  %p2203_p7 = pnand %p2202_p3, %p2196_p10 }
  0xaa   : > { %1923 = vmatprep.subr.bf16.mxu1 %v1922_v27 }
  0xab   : > { %1893 = vmatpush3.bf16.msra.mxu0 %v1890_v24 }
  0xac   : > { %1895 = vmatprep.subr.bf16.mxu0 %v1894_v28 }
  0xad   : > { %1925 = vmatpush3.bf16.msra.mxu1 %v1922_v27 }
  0xaf   : > { %1897 = vmatpush3.bf16.msra.mxu0 %v1894_v28 }
  0xb0   : > { %1876 = vmatmul.mubr.msk.f32.vlgmr.msra.gmra.mrb[0].mxu1 %vm536_vm0, %v520_v32  ;;  %1899 = vmatprep.subr.bf16.mxu0 %v1898_v31 }
  0xb3   : > { %1901 = vmatpush3.bf16.msra.mxu0 %v1898_v31 }
  0xb4   : > { %1903 = vmatprep.subr.bf16.mxu0 %v1902_v35 }
  0xb7   : > { %1905 = vmatpush3.bf16.msra.mxu0 %v1902_v35 }
  0xb8   : > { %1907 = vmatprep.subr.bf16.mxu0 %v1906_v38 }
  0xbb   : > { %1909 = vmatpush3.bf16.msra.mxu0 %v1906_v38 }
  0xbe   : > { %1836 = vmatmul.mubr.f32.vlgmr.msra.gmra.mrb[0].mxu0 %v2583_v39 }
  0xbf   : > { %1838 = vmatprep.mubr.f32.mxu0 %v2586_v40 }
  0xc2   : > { %1839 = vmatmul.mubr.f32.gmra.mrb[2].mxu0 %v2591_v41 }
  0xc3   : > { %1841 = vmatprep.mubr.f32.mxu0 %v2594_v42 }
  0xc6   : > { %1842 = vmatmul.mubr.f32.gmra.mrb[4].mxu0 %v2599_v43 }
  0xc7   : > { %1844 = vmatprep.mubr.f32.mxu0 %v348_v44  ;;  %v2663_v44 = vld [vmem:[%s3039_s5] ss:$0 sm:$0xff] }
  0xca   : > { %1845 = vmatmul.mubr.f32.gmra.mrb[6].mxu0 %v349_v45 }
  0xcb   : > { %1847 = vmatprep.mubr.f32.mxu0 %v2605_v46 }
  0xce   : > { %1848 = vmatmul.mubr.f32.gmra.mrb[8].mxu0 %v2609_v47 }
  0xcf   : > { %1850 = vmatprep.mubr.f32.mxu0 %v2612_v48 }
  0xd2   : > { %1851 = vmatmul.mubr.f32.gmra.mrb[10].mxu0 %v2617_v49 }
  0xd3   : > { %1853 = vmatprep.mubr.f32.mxu0 %v2620_v50 }
  0xd6   : > { %1854 = vmatmul.mubr.f32.gmra.mrb[12].mxu0 %v2625_v51 }
  0xd7   : > { %1856 = vmatprep.mubr.f32.mxu0 %v2628_v52 }
  0xda   : > { %1857 = vmatmul.mubr.f32.gmra.mrb[14].mxu0 %v357_v53 }
 0x183   : > { %v1877_v60 = vpop.f32.mrb[0].mxu1 }
 0x184   : > { %v609_v62 = vpop.f32.mrb[1].mxu1  ;;  %v615_v8 = vadd.f32 %v1877_v60, %v1749_v59 }
 0x185   : > { %v610_v63 = vadd.f32 %v1749_v59, %v609_v62 }
 0x186   : > { %v676_v17 = vrot.slane %v615_v8, %v2640_v61  ;;  %v669_v27 = vcombine.high %v615_v8, %v615_v8 }
 0x187   : > { %v627_v0 = vrot.slane %v610_v63, %v2640_v61  ;;  %v620_v1 = vcombine.high %v610_v63, %v610_v63 }
 0x188   : > { %v684_v28 = vcombine.high %v676_v17, %v676_v17  ;;  %v683_v37 = vrot.slane %v669_v27, %v2640_v61  ;;  %v692_v55 = vrot.slane %v676_v17, %v2640_v61 }
 0x189   : > { %v635_v2 = vcombine.high %v627_v0, %v627_v0  ;;  %v634_v4 = vrot.slane %v620_v1, %v2640_v61  ;;  %v643_v6 = vrot.slane %v627_v0, %v2640_v61 }
 0x18a   : > { %v706_v45 = vrot.slane %v684_v28, %v2640_v61  ;;  %v699_v17 = vrot.slane %v683_v37, %v2640_v61 }
 0x18b   : > { %v657_v3 = vrot.slane %v635_v2, %v2640_v61  ;;  %v636_v10 = vcombine.high %v634_v4, %v634_v4  ;;  %v721_v12 = vrot.slane %v643_v6, %v2646_v5  ;;  %v665_v13 = vcombine.high %v643_v6, %v643_v6 }
 0x18c   : > { %v650_v22 = vrot.slane %v634_v4, %v2640_v61  ;;  %v757_v1 = vrot.slane %v706_v45, %v2646_v5  ;;  %v716_v2 = vcombine.high %v706_v45, %v706_v45  ;;  %v753_v6 = vrot.slane %v692_v55, %v2646_v5 }
 0x18d   : > { %v725_v7 = vrot.slane %v657_v3, %v2646_v5  ;;  %v667_v9 = vcombine.high %v657_v3, %v657_v3  ;;  %v664_v19 = vrot.slane %v636_v10, %v2640_v61  ;;  %v729_v21 = vrot.slane %v665_v13, %v2646_v5 }
 0x18e   : > { %v737_v32 = vrot.slane %v650_v22, %v2646_v5  ;;  %v666_v33 = vcombine.high %v650_v22, %v650_v22  ;;  %v685_v3 = vcombine.high %v683_v37, %v683_v37  ;;  %v765_v13 = vrot.slane %v716_v2, %v2646_v5 }
 0x18f   : > { %v733_v18 = vrot.slane %v667_v9, %v2646_v5  ;;  %v741_v29 = vrot.slane %v664_v19, %v2646_v5  ;;  %v668_v30 = vcombine.high %v664_v19, %v664_v19  ;;  %v769_v27 = vrot.slane %v699_v17, %v2646_v5 }
 0x190   : > { %v745_v54 = vrot.slane %v666_v33, %v2646_v5  ;;  %v715_v28 = vcombine.high %v699_v17, %v699_v17 }
 0x191   : > { %v1837_v11 = vpop.f32.mrb[0].mxu0  ;;  %v749_v38 = vrot.slane %v668_v30, %v2646_v5 }
 0x192   : > { %v799_v14 = vadd.f32 %v1837_v11, %v725_v7  ;;  %v440_v15 = vpop.f32.mrb[1].mxu0  ;;  %v714_v7 = vcombine.high %v692_v55, %v692_v55 }
 0x193   : > { %v798_v16 = vadd.f32 %v721_v12, %v440_v15 }
 0x194   : > { %2006 = vtanh.f32 %v799_v14  ;;  %v713_v14 = vrot.slane %v685_v3, %v2640_v61 }
 0x195   : > { %v1840_v20 = vpop.f32.mrb[2].mxu0  ;;  %2008 = vtanh.f32 %v798_v16  ;;  %v761_v16 = vrot.slane %v714_v7, %v2646_v5 }
 0x196   : > { %v801_v24 = vadd.f32 %v1840_v20, %v733_v18  ;;  %v450_v25 = vpop.f32.mrb[3].mxu0 }
 0x197   : > { %v800_v26 = vadd.f32 %v729_v21, %v450_v25  ;;  %v717_v25 = vcombine.high %v713_v14, %v713_v14 }
 0x198   : > { %2010 = vtanh.f32 %v801_v24  ;;  %v773_v24 = vrot.slane %v713_v14, %v2646_v5 }
 0x199   : > { %v1843_v31 = vpop.f32.mrb[4].mxu0  ;;  %2012 = vtanh.f32 %v800_v26  ;;  %v781_v33 = vrot.slane %v717_v25, %v2646_v5 }
 0x19a   : > { %v803_v34 = vadd.f32 %v1843_v31, %v741_v29  ;;  %v460_v35 = vpop.f32.mrb[5].mxu0 }
 0x19b   : > { %v802_v36 = vadd.f32 %v737_v32, %v460_v35  ;;  %v777_v35 = vrot.slane %v715_v28, %v2646_v5 }
 0x19c   : > { %2014 = vtanh.f32 %v803_v34 }
 0x19d   : > { %v1846_v53 = vpop.f32.mrb[6].mxu0 }
 0x19e   : > { %v2007_v57 = vpop.eup %2006  ;;  %v805_v59 = vadd.f32 %v1846_v53, %v749_v38  ;;  %v470_v60 = vpop.f32.mrb[7].mxu0 }
 0x19f   : > { %v804_v62 = vadd.f32 %v745_v54, %v470_v60  ;;  %v838_v63 = vmul.f32 %v2007_v57, %v2663_v44  ;;  %v2009_v0 = vpop.eup %2008 }
 0x1a0   : > { %v837_v11 = vmul.f32 %v2009_v0, %v2663_v44 }
 0x1a1   : > { %855 = vadd.xlane.f32.xlu0 %v838_v63  ;;  %v1849_v4 = vpop.f32.mrb[8].mxu0 }
 0x1a2   : > { %v807_v8 = vadd.f32 %v1849_v4, %v757_v1  ;;  %v480_v9 = vpop.f32.mrb[9].mxu0  ;;  %v2011_v12 = vpop.eup %2010 }
 0x1a3   : > { %v806_v10 = vadd.f32 %v753_v6, %v480_v9  ;;  %v840_v21 = vmul.f32 %v2011_v12, %v2663_v44  ;;  %v2013_v22 = vpop.eup %2012 }
 0x1a4   : > { %2016 = vtanh.f32 %v807_v8  ;;  %v839_v31 = vmul.f32 %v2013_v22, %v2663_v44 }
 0x1a5   : > { %2018 = vtanh.f32 %v802_v36  ;;  %853 = vadd.xlane.f32.xlu0 %v837_v11  ;;  %v1852_v15 = vpop.f32.mrb[10].mxu0 }
 0x1a6   : > { %2020 = vtanh.f32 %v806_v10  ;;  %v809_v18 = vadd.f32 %v1852_v15, %v765_v13  ;;  %v490_v19 = vpop.f32.mrb[11].mxu0  ;;  %v2015_v32 = vpop.eup %2014 }
 0x1a7   : > { %v808_v20 = vadd.f32 %v761_v16, %v490_v19  ;;  %2022 = vtanh.f32 %v804_v62  ;;  %v842_v54 = vmul.f32 %v2015_v32, %v2663_v44 }
 0x1a8   : > { %2024 = vtanh.f32 %v809_v18  ;;  %v902_v18 = vand.u32 127, %v624_v56 }
 0x1a9   : > { %859 = vadd.xlane.f32.xlu0 %v840_v21  ;;  %v1855_v26 = vpop.f32.mrb[12].mxu0  ;;  %2026 = vtanh.f32 %v805_v59 }
 0x1aa   : > { %v811_v29 = vadd.f32 %v1855_v26, %v773_v24  ;;  %v500_v30 = vpop.f32.mrb[13].mxu0  ;;  %2028 = vtanh.f32 %v808_v20  ;;  %v2704_v20 = vsub.s32 %v902_v18, %v2634_v58 }
 0x1ab   : > { %v810_v61 = vadd.f32 %v769_v27, %v500_v30 }
 0x1ac   : > { %2030 = vtanh.f32 %v811_v29 }
 0x1ad   : > { %857 = vadd.xlane.f32.xlu0 %v839_v31  ;;  %v1858_v34 = vpop.f32.mrb[14].mxu0  ;;  %2032 = vtanh.f32 %v810_v61 }
 0x1ae   : > { %v2017_v36 = vpop.eup %2016  ;;  %v813_v37 = vadd.f32 %v1858_v34, %v781_v33  ;;  %v510_v38 = vpop.f32.mrb[15].mxu0 }
 0x1af   : > { %v2019_v45 = vpop.eup %2018  ;;  %v812_v53 = vadd.f32 %v777_v35, %v510_v38  ;;  %v846_v55 = vmul.f32 %v2017_v36, %v2663_v44 }
 0x1b0   : > { %v2021_v57 = vpop.eup %2020  ;;  %v841_v59 = vmul.f32 %v2019_v45, %v2663_v44 }
 0x1b1   : > { %863 = vadd.xlane.f32.xlu0 %v842_v54  ;;  %871 = vadd.xlane.f32.xlu1 %v846_v55  ;;  %v2023_v60 = vpop.eup %2022  ;;  %v845_v62 = vmul.f32 %v2021_v57, %v2663_v44  ;;  %2034 = vtanh.f32 %v812_v53 }
 0x1b2   : > { %v2025_v63 = vpop.eup %2024  ;;  %v843_v1 = vmul.f32 %v2023_v60, %v2663_v44  ;;  %2036 = vtanh.f32 %v813_v37 }
 0x1b3   : > { %v2027_v0 = vpop.eup %2026  ;;  %v848_v2 = vmul.f32 %v2025_v63, %v2663_v44 }
 0x1b4   : > { %v2029_v3 = vpop.eup %2028  ;;  %v844_v4 = vmul.f32 %v2027_v0, %v2663_v44 }
 0x1b5   : > { %861 = vadd.xlane.f32.xlu0 %v841_v59  ;;  %869 = vadd.xlane.f32.xlu1 %v845_v62  ;;  %v847_v6 = vmul.f32 %v2029_v3, %v2663_v44 }
 0x1b6   : > { %v2031_v7 = vpop.eup %2030 }
 0x1b7   : > { %v850_v8 = vmul.f32 %v2031_v7, %v2663_v44  ;;  %v2033_v9 = vpop.eup %2032 }
 0x1b8   : > { %v849_v10 = vmul.f32 %v2033_v9, %v2663_v44 }
 0x1b9   : > { %865 = vadd.xlane.f32.xlu0 %v843_v1  ;;  %875 = vadd.xlane.f32.xlu1 %v848_v2 }
 0x1bb   : > { %v2035_v11 = vpop.eup %2034 }
 0x1bc   : > { %v851_v12 = vmul.f32 %v2035_v11, %v2663_v44  ;;  %v2037_v13 = vpop.eup %2036 }
 0x1bd   : > { %867 = vadd.xlane.f32.xlu0 %v844_v4  ;;  %873 = vadd.xlane.f32.xlu1 %v847_v6  ;;  %v852_v14 = vmul.f32 %v2037_v13, %v2663_v44 }
 0x1c1   : > { %879 = vadd.xlane.f32.xlu1 %v850_v8 }
 0x1c5   : > { %877 = vadd.xlane.f32.xlu1 %v849_v10 }
 0x1c9   : > { %881 = vadd.xlane.f32.xlu1 %v851_v12 }
 0x1cd   : > { %883 = vadd.xlane.f32.xlu1 %v852_v14 }
 0x22e   : > { %v2694_v15 = vpop.xlane.xlu0 %855 }
 0x22f   : > { %v910_v25 = vrot.slane %v2694_v15, %v2704_v20 }
 0x232   : > { %v2696_v16 = vpop.xlane.xlu0 %853 }
 0x233   : > { %v906_v44 = vrot.slane %v2696_v16, %v2704_v20 }
 0x235   : > { %v968_v27 = vsel %vm967_vm1, %v910_v25, %v906_v44  ;;  %v2280_v44 = vmov 0   ;;  %v2779_v25 = vsub.s32 2, %v2634_v58 }
 0x236   : > { %v2698_v17 = vpop.xlane.xlu0 %859  ;;  %2005 = vset.pattern.permute.xlu1 %v2280_v44  ;;  %2004 = vset.pattern.permute.xlu0 %v2280_v44 }
 0x237   : > { %v918_v30 = vrot.slane %v2698_v17, %v2704_v20 }
 0x23a   : > { %v2701_v19 = vpop.xlane.xlu0 %857 }
 0x23b   : > { %v914_v24 = vrot.slane %v2701_v19, %v2704_v20 }
 0x23d   : > { %v970_v28 = vsel %vm969_vm2, %v914_v24, %v968_v27  ;;  %v2776_v24 = vsub.s32 1, %v2634_v58  ;;  %v2782_v27 = vsub.s32 3, %v2634_v58 }
 0x23e   : > { %v2706_v21 = vpop.xlane.xlu0 %863  ;;  %v2708_v22 = vpop.xlane.xlu1 %871  ;;  %v972_v32 = vsel %vm971_vm3, %v918_v30, %v970_v28 }
 0x23f   : > { %v926_v35 = vrot.slane %v2706_v21, %v2704_v20  ;;  %v942_v62 = vrot.slane %v2708_v22, %v2704_v20 }
 0x242   : > { %v2716_v56 = vpop.xlane.xlu0 %861  ;;  %v2718_v26 = vpop.xlane.xlu1 %869 }
 0x243   : > { %v922_v29 = vrot.slane %v2716_v56, %v2704_v20  ;;  %v938_v60 = vrot.slane %v2718_v26, %v2704_v20 }
 0x245   : > { %v974_v33 = vsel %vm973_vm4, %v922_v29, %v972_v32  ;;  %v981_v0 = vsel %vm967_vm1, %v942_v62, %v938_v60 }
 0x246   : > { %v2726_v61 = vpop.xlane.xlu0 %865  ;;  %v2728_v31 = vpop.xlane.xlu1 %875  ;;  %v976_v45 = vsel %vm975_vm5, %v926_v35, %v974_v33  ;;  %v2795_v35 = vsub.s32 4, %v2634_v58 }
 0x247   : > { %v930_v34 = vrot.slane %v2726_v61, %v2704_v20  ;;  %v950_v3 = vrot.slane %v2728_v31, %v2704_v20 }
 0x249   : > { %v978_v53 = vsel %vm977_vm6, %v930_v34, %v976_v45 }
 0x24a   : > { %v2736_v36 = vpop.xlane.xlu0 %867  ;;  %v2738_v37 = vpop.xlane.xlu1 %873 }
 0x24b   : > { %v934_v38 = vrot.slane %v2736_v36, %v2704_v20  ;;  %v946_v59 = vrot.slane %v2738_v37, %v2704_v20 }
 0x24d   : > { %v980_v54 = vsel %vm979_vm7, %v934_v38, %v978_v53  ;;  %v982_v1 = vsel %vm969_vm2, %v946_v59, %v981_v0  ;;  %v2807_v59 = vsub.s32 6, %v2634_v58 }
 0x24e   : > { %v2745_v55 = vpop.xlane.xlu1 %879  ;;  %v991_v57 = vsel %vm990_vm8, %v980_v54, -inf  ;;  %v983_v6 = vsel %vm971_vm3, %v950_v3, %v982_v1 }
 0x24f   : > { %992 = vmax.xlane.f32.xlu0 %v991_v57  ;;  %v958_v9 = vrot.slane %v2745_v55, %v2704_v20  ;;  %v2801_v57 = vsub.s32 5, %v2634_v58 }
 0x252   : > { %v878_v63 = vpop.xlane.xlu1 %877 }
 0x253   : > { %v954_v2 = vrot.slane %v878_v63, %v2704_v20 }
 0x255   : > { %v984_v7 = vsel %vm973_vm4, %v954_v2, %v983_v6 }
 0x256   : > { %v2759_v4 = vpop.xlane.xlu1 %881  ;;  %v985_v12 = vsel %vm975_vm5, %v958_v9, %v984_v7 }
 0x257   : > { %v962_v8 = vrot.slane %v2759_v4, %v2704_v20 }
 0x259   : > { %v986_v13 = vsel %vm977_vm6, %v962_v8, %v985_v12 }
 0x25a   : > { %v2767_v10 = vpop.xlane.xlu1 %883 }
 0x25b   : > { %v966_v11 = vrot.slane %v2767_v10, %v2704_v20 }
 0x25d   : > { %v987_v14 = vsel %vm979_vm7, %v966_v11, %v986_v13 }
 0x25e   : > { %v994_v18 = vsel %vm990_vm8, %v987_v14, -inf }
 0x25f   : > { %995 = vmax.xlane.f32.xlu1 %v994_v18 }
 0x2dc   : > { %v2784_v28 = vpop.xlane.xlu0 %992 }
 0x2dd   : > { %v1002_v29 = vrot.slane %v2784_v28, %v2646_v5  ;;  %v1006_v30 = vrot.slane %v2784_v28, %v2776_v24  ;;  %v1010_v32 = vrot.slane %v2784_v28, %v2779_v25  ;;  %v1014_v38 = vrot.slane %v2784_v28, %v2782_v27 }
 0x2de   : > { %v1018_v60 = vrot.slane %v2784_v28, %v2795_v35  ;;  %v1022_v62 = vrot.slane %v2784_v28, %v2801_v57  ;;  %v1026_v1 = vrot.slane %v2784_v28, %v2807_v59 }
 0x2df   : > { %v1079_v33 = vsub.f32 %v2696_v16, %v1002_v29  ;;  %v1080_v34 = vsub.f32 %v2694_v15, %v1006_v30  ;;  %v1081_v45 = vsub.f32 %v2701_v19, %v1010_v32  ;;  %v1082_v16 = vsub.f32 %v2698_v17, %v1014_v38 }
 0x2e0   : > { %v1083_v19 = vsub.f32 %v2716_v56, %v1018_v60  ;;  %v1084_v2 = vsub.f32 %v2706_v21, %v1022_v62  ;;  %v1085_v56 = vsub.f32 %v2726_v61, %v1026_v1  ;;  %v2833_v32 = vsub.s32 7, %v2634_v58 }
 0x2e1   : > { %v1095_v53 = vmul.f32 1.442695, %v1079_v33  ;;  %v1097_v54 = vmul.f32 1.442695, %v1080_v34  ;;  %v1099_v15 = vmul.f32 1.442695, %v1081_v45 }
 0x2e2   : > { %v1101_v0 = vmul.f32 1.442695, %v1082_v16  ;;  %v1103_v3 = vmul.f32 1.442695, %v1083_v19  ;;  %v1105_v11 = vmul.f32 1.442695, %v1084_v2 }
 0x2e3   : > { %2038 = vpow2.f32 %v1095_v53  ;;  %v1107_v61 = vmul.f32 1.442695, %v1085_v56 }
 0x2e4   : > { %2040 = vpow2.f32 %v1097_v54 }
 0x2e5   : > { %2042 = vpow2.f32 %v1099_v15 }
 0x2e6   : > { %2044 = vpow2.f32 %v1101_v0 }
 0x2e7   : > { %2046 = vpow2.f32 %v1103_v3 }
 0x2e8   : > { %2048 = vpow2.f32 %v1105_v11 }
 0x2ec   : > { %v996_v17 = vpop.xlane.xlu1 %995 }
 0x2ed   : > { %v2815_v6 = vpop.eup %2038  ;;  %v1050_v8 = vrot.slane %v996_v17, %v2795_v35  ;;  %v1054_v9 = vrot.slane %v996_v17, %v2801_v57  ;;  %v1034_v21 = vrot.slane %v996_v17, %v2646_v5  ;;  %v1058_v14 = vrot.slane %v996_v17, %v2807_v59 }
 0x2ee   : > { %v2817_v7 = vpop.eup %2040  ;;  %1144 = vperm.xlu0 %2004, %v2815_v6   ;;  %v1038_v29 = vrot.slane %v996_v17, %v2776_v24  ;;  %v1042_v38 = vrot.slane %v996_v17, %v2779_v25 }
 0x2ef   : > { %1147 = vperm.xlu1 %2005, %v2817_v7   ;;  %v1091_v12 = vsub.f32 %v878_v63, %v1050_v8  ;;  %v2825_v13 = vpop.eup %2042  ;;  %v1092_v18 = vsub.f32 %v2745_v55, %v1054_v9  ;;  %v1087_v30 = vsub.f32 %v2718_v26, %v1034_v21  ;;  %v1062_v63 = vrot.slane %v996_v17, %v2833_v32 }
 0x2f0   : > { %v2835_v33 = vpop.eup %2044  ;;  %v1093_v34 = vsub.f32 %v2759_v4, %v1058_v14  ;;  %v1088_v45 = vsub.f32 %v2708_v22, %v1038_v29  ;;  %v1046_v4 = vrot.slane %v996_v17, %v2782_v27  ;;  %v1089_v60 = vsub.f32 %v2738_v37, %v1042_v38 }
 0x2f1   : > { %v1119_v44 = vmul.f32 1.442695, %v1091_v12  ;;  %v1121_v55 = vmul.f32 1.442695, %v1092_v18  ;;  %v1111_v53 = vmul.f32 1.442695, %v1087_v30  ;;  %v2842_v26 = vpop.eup %2046  ;;  %v1094_v58 = vsub.f32 %v2767_v10, %v1062_v63 }
 0x2f2   : > { %v1123_v54 = vmul.f32 1.442695, %v1093_v34  ;;  %v1113_v16 = vmul.f32 1.442695, %v1088_v45  ;;  %v2848_v15 = vpop.eup %2048  ;;  %v1030_v22 = vrot.slane %v2784_v28, %v2833_v32  ;;  %v1090_v10 = vsub.f32 %v2728_v31, %v1046_v4 }
 0x2f3   : > { %1150 = vperm.xlu1 %2005, %v2825_v13   ;;  %2050 = vpow2.f32 %v1119_v44  ;;  %v1125_v62 = vmul.f32 1.442695, %v1094_v58  ;;  %v1115_v19 = vmul.f32 1.442695, %v1089_v60 }
 0x2f4   : > { %2052 = vpow2.f32 %v1107_v61  ;;  %v1086_v37 = vsub.f32 %v2736_v36, %v1030_v22  ;;  %v1117_v2 = vmul.f32 1.442695, %v1090_v10 }
 0x2f5   : > { %2054 = vpow2.f32 %v1121_v55 }
 0x2f6   : > { %2056 = vpow2.f32 %v1111_v53  ;;  %v1109_v31 = vmul.f32 1.442695, %v1086_v37 }
 0x2f7   : > { %1153 = vperm.xlu1 %2005, %v2835_v33   ;;  %2058 = vpow2.f32 %v1123_v54 }
 0x2f8   : > { %2060 = vpow2.f32 %v1113_v16 }
 0x2f9   : > { %2062 = vpow2.f32 %v1125_v62 }
 0x2fa   : > { %2064 = vpow2.f32 %v1115_v19 }
 0x2fb   : > { %1156 = vperm.xlu1 %2005, %v2842_v26   ;;  %2066 = vpow2.f32 %v1117_v2 }
 0x2fc   : > { %2068 = vpow2.f32 %v1109_v31 }
 0x2fd   : > { %v2854_v0 = vpop.eup %2050 }
 0x2fe   : > { %v2856_v1 = vpop.eup %2052  ;;  %1180 = vperm.xlu0 %2004, %v2854_v0  }
 0x2ff   : > { %1159 = vperm.xlu1 %2005, %v2848_v15   ;;  %v2861_v3 = vpop.eup %2054 }
 0x300   : > { %v2863_v28 = vpop.eup %2056 }
 0x301   : > { %v2867_v17 = vpop.eup %2058 }
 0x302   : > { %1183 = vperm.xlu0 %2004, %v2861_v3   ;;  %v2869_v8 = vpop.eup %2060 }
 0x303   : > { %1162 = vperm.xlu1 %2005, %v2856_v1   ;;  %v2873_v36 = vpop.eup %2062 }
 0x304   : > { %v2875_v56 = vpop.eup %2064 }
 0x305   : > { %v2879_v9 = vpop.eup %2066 }
 0x306   : > { %1186 = vperm.xlu0 %2004, %v2867_v17   ;;  %v2882_v11 = vpop.eup %2068 }
 0x307   : > { %1168 = vperm.xlu1 %2005, %v2863_v28  }
 0x30a   : > { %1189 = vperm.xlu0 %2004, %v2873_v36  }
 0x30b   : > { %1171 = vperm.xlu1 %2005, %v2869_v8  }
 0x30f   : > { %1174 = vperm.xlu1 %2005, %v2875_v56  }
 0x313   : > { %1177 = vperm.xlu1 %2005, %v2879_v9  }
 0x317   : > { %1165 = vperm.xlu1 %2005, %v2882_v11  }
 0x36d   : > { %v1145_v44 = vpop.permute.xlu0 %1144 }
 0x36e   : > { %v1148_v21 = vpop.permute.xlu1 %1147  ;;  %v1194_v53 = vrot.slane %v1145_v44, %v2704_v20 }
 0x36f   : > { %v1198_v58 = vrot.slane %v1148_v21, %v2704_v20 }
 0x371   : > { %v1255_v19 = vsel %vm967_vm1, %v1198_v58, %v1194_v53 }
 0x372   : > { %v1151_v12 = vpop.permute.xlu1 %1150 }
 0x373   : > { %v1202_v4 = vrot.slane %v1151_v12, %v2704_v20 }
 0x375   : > { %v1256_v21 = vsel %vm969_vm2, %v1202_v4, %v1255_v19 }
 0x376   : > { %v1154_v14 = vpop.permute.xlu1 %1153 }
 0x377   : > { %v1206_v16 = vrot.slane %v1154_v14, %v2704_v20 }
 0x37a   : > { %v1157_v18 = vpop.permute.xlu1 %1156 }
 0x37b   : > { %v1210_v22 = vrot.slane %v1157_v18, %v2704_v20  ;;  %v1257_v18 = vsel %vm971_vm3, %v1206_v16, %v1256_v21 }
 0x37d   : > { %v1181_v29 = vpop.permute.xlu0 %1180 }
 0x37e   : > { %v1160_v61 = vpop.permute.xlu1 %1159  ;;  %v1242_v12 = vrot.slane %v1181_v29, %v2704_v20 }
 0x37f   : > { %v1214_v37 = vrot.slane %v1160_v61, %v2704_v20  ;;  %v1258_v61 = vsel %vm973_vm4, %v1210_v22, %v1257_v18 }
 0x381   : > { %v1184_v34 = vpop.permute.xlu0 %1183  ;;  %v1259_v29 = vsel %vm975_vm5, %v1214_v37, %v1258_v61 }
 0x382   : > { %v1163_v30 = vpop.permute.xlu1 %1162 }
 0x383   : > { %v1218_v44 = vrot.slane %v1163_v30, %v2704_v20 }
 0x385   : > { %v1187_v38 = vpop.permute.xlu0 %1186 }
 0x386   : > { %v1169_v63 = vpop.permute.xlu1 %1168  ;;  %v1250_v53 = vrot.slane %v1187_v38, %v2704_v20 }
 0x387   : > { %v1226_v62 = vrot.slane %v1169_v63, %v2704_v20 }
 0x389   : > { %v1190_v14 = vpop.permute.xlu0 %1189 }
 0x38a   : > { %v1172_v55 = vpop.permute.xlu1 %1171  ;;  %v1254_v30 = vrot.slane %v1190_v14, %v2704_v20 }
 0x38b   : > { %v1230_v54 = vrot.slane %v1172_v55, %v2704_v20  ;;  %v1246_v55 = vrot.slane %v1184_v34, %v2704_v20  ;;  %v1260_v34 = vsel %vm977_vm6, %v1218_v44, %v1259_v29 }
 0x38d   : > { %v1262_v2 = vsel %vm967_vm1, %v1230_v54, %v1226_v62 }
 0x38e   : > { %v1175_v45 = vpop.permute.xlu1 %1174 }
 0x38f   : > { %v1234_v60 = vrot.slane %v1175_v45, %v2704_v20 }
 0x391   : > { %v1263_v63 = vsel %vm969_vm2, %v1234_v60, %v1262_v2 }
 0x392   : > { %v1178_v10 = vpop.permute.xlu1 %1177 }
 0x393   : > { %v1238_v31 = vrot.slane %v1178_v10, %v2704_v20 }
 0x395   : > { %v1264_v45 = vsel %vm971_vm3, %v1238_v31, %v1263_v63 }
 0x396   : > { %v1265_v58 = vsel %vm973_vm4, %v1242_v12, %v1264_v45  ;;  %v1166_v54 = vpop.permute.xlu1 %1165 }
 0x397   : > { %v1222_v4 = vrot.slane %v1166_v54, %v2704_v20  ;;  %v1266_v60 = vsel %vm975_vm5, %v1246_v55, %v1265_v58 }
 0x398   : > { %v1267_v16 = vsel %vm977_vm6, %v1250_v53, %v1266_v60 }
 0x399   : > { %v1268_v62 = vsel %vm979_vm7, %v1254_v30, %v1267_v16  ;;  %v1261_v22 = vsel %vm979_vm7, %v1222_v4, %v1260_v34 }
 0x39a   : > { %v1274_v38 = vsel %vm990_vm8, %v1268_v62, 0.0  ;;  %v1271_v10 = vsel %vm990_vm8, %v1261_v22, 0.0 }
 0x39b   : > { %1275 = vadd.xlane.f32.xlu0 %v1274_v38  ;;  %1272 = vadd.xlane.f32.xlu1 %v1271_v10 }
 0x428   : > { %v1276_v19 = vpop.xlane.xlu0 %1275  ;;  %v1273_v37 = vpop.xlane.xlu1 %1272 }
 0x429   : > { %2070 = vrcp.f32 %v1276_v19 }
 0x42a   : > { %2072 = vrcp.f32 %v1273_v37 }
 0x433   : > { %v2071_v20 = vpop.eup %2070 }
 0x434   : > { %v2073_v2 = vpop.eup %2072  ;;  %v1320_v63 = vrot.slane %v2071_v20, %v2776_v24  ;;  %v1324_v61 = vrot.slane %v2071_v20, %v2779_v25  ;;  %v1316_v54 = vrot.slane %v2071_v20, %v2646_v5 }
 0x435   : > { %v1288_v31 = vrot.slane %v2073_v2, %v2776_v24  ;;  %v1284_v21 = vrot.slane %v2073_v2, %v2646_v5  ;;  %v1292_v14 = vrot.slane %v2073_v2, %v2779_v25  ;;  %v1296_v45 = vrot.slane %v2073_v2, %v2782_v27 }
 0x436   : > { %v1370_v55 = vmul.f32 %v2869_v8, %v1320_v63  ;;  %v1300_v53 = vrot.slane %v2073_v2, %v2795_v35  ;;  %v1328_v24 = vrot.slane %v2071_v20, %v2782_v27  ;;  %v1304_v58 = vrot.slane %v2073_v2, %v2801_v57 }
 0x437   : > { %v1362_v12 = vmul.f32 %v2817_v7, %v1288_v31  ;;  %v1361_v44 = vmul.f32 %v2815_v6, %v1284_v21  ;;  %v1363_v18 = vmul.f32 %v2825_v13, %v1292_v14  ;;  %v1364_v7 = vmul.f32 %v2835_v33, %v1296_v45 }
 0x438   : > { %v1371_v6 = vmul.f32 %v2875_v56, %v1324_v61  ;;  %v1365_v13 = vmul.f32 %v2842_v26, %v1300_v53  ;;  %v1372_v8 = vmul.f32 %v2879_v9, %v1328_v24  ;;  %v1332_v25 = vrot.slane %v2071_v20, %v2795_v35 }
 0x439   : > { %1384 = vperm.xlu1 %2005, %v1362_v12   ;;  %1379 = vperm.xlu0 %2004, %v1361_v44   ;;  %v1366_v33 = vmul.f32 %v2848_v15, %v1304_v58  ;;  %v1336_v27 = vrot.slane %v2071_v20, %v2801_v57  ;;  %v1369_v26 = vmul.f32 %v2863_v28, %v1316_v54 }
 0x43a   : > { %v1373_v56 = vmul.f32 %v2854_v0, %v1332_v25  ;;  %v1308_v29 = vrot.slane %v2073_v2, %v2807_v59  ;;  %v1340_v35 = vrot.slane %v2071_v20, %v2807_v59  ;;  %v1312_v5 = vrot.slane %v2073_v2, %v2833_v32 }
 0x43b   : > { %v1374_v9 = vmul.f32 %v2861_v3, %v1336_v27  ;;  %v1344_v57 = vrot.slane %v2071_v20, %v2833_v32 }
 0x43c   : > { %v1367_v15 = vmul.f32 %v2856_v1, %v1308_v29  ;;  %v1375_v0 = vmul.f32 %v2867_v17, %v1340_v35  ;;  %v1368_v28 = vmul.f32 %v2882_v11, %v1312_v5 }
 0x43d   : > { %1389 = vperm.xlu1 %2005, %v1363_v18   ;;  %1424 = vperm.xlu0 %2004, %v1370_v55   ;;  %v1376_v3 = vmul.f32 %v2873_v36, %v1344_v57 }
 0x441   : > { %1394 = vperm.xlu1 %2005, %v1364_v7   ;;  %1429 = vperm.xlu0 %2004, %v1371_v6  }
 0x445   : > { %1399 = vperm.xlu1 %2005, %v1365_v13   ;;  %1434 = vperm.xlu0 %2004, %v1372_v8  }
 0x449   : > { %1404 = vperm.xlu1 %2005, %v1366_v33   ;;  %1439 = vperm.xlu0 %2004, %v1373_v56  }
 0x44d   : > { %1419 = vperm.xlu1 %2005, %v1369_v26   ;;  %1444 = vperm.xlu0 %2004, %v1374_v9  }
 0x451   : > { %1409 = vperm.xlu1 %2005, %v1367_v15   ;;  %1449 = vperm.xlu0 %2004, %v1375_v0  }
 0x455   : > { %1414 = vperm.xlu1 %2005, %v1368_v28   ;;  %1454 = vperm.xlu0 %2004, %v1376_v3  }
 0x4b8   : > { %v1385_v30 = vpop.permute.xlu1 %1384  ;;  %v1380_v59 = vpop.permute.xlu0 %1379 }
 0x4b9   : > { %v1458_v4 = vmul.f32 %v1385_v30, %v2583_v39  ;;  %v1457_v1 = vmul.f32 %v1380_v59, %v2577_v23 }
 0x4bb   : > { %v1479_v60 = vrot.slane %v1458_v4, 4  ;;  %v1473_v34 = vrot.slane %v1457_v1, 4 }
 0x4bc   : > { %v1390_v17 = vpop.permute.xlu1 %1389  ;;  %v1425_v16 = vpop.permute.xlu0 %1424 }
 0x4bd   : > { %v1459_v32 = vmul.f32 %v1390_v17, %v2586_v40  ;;  %v1466_v62 = vmul.f32 %v1425_v16, %v2609_v47  ;;  %v1480_v22 = vadd.f32 %v1479_v60, %v1458_v4  ;;  %v1474_v19 = vadd.f32 %v1473_v34, %v1457_v1 }
 0x4bf   : > { %v1485_v11 = vrot.slane %v1459_v32, 4  ;;  %v1527_v38 = vrot.slane %v1466_v62, 4  ;;  %v1481_v23 = vrot.slane %v1480_v22, 2  ;;  %v1475_v40 = vrot.slane %v1474_v19, 2 }
 0x4c0   : > { %v1395_v36 = vpop.permute.xlu1 %1394  ;;  %v1430_v10 = vpop.permute.xlu0 %1429 }
 0x4c1   : > { %v1486_v37 = vadd.f32 %v1485_v11, %v1459_v32  ;;  %v1460_v20 = vmul.f32 %v1395_v36, %v2591_v41  ;;  %v1467_v39 = vmul.f32 %v1430_v10, %v2612_v48  ;;  %v1528_v2 = vadd.f32 %v1527_v38, %v1466_v62  ;;  %v2074_v11 = vld [vmem:[%s2560_s14 + $0x30] sm:$0xff] }
 0x4c2   : > { %v1482_v55 = vadd.f32 %v1481_v23, %v1480_v22  ;;  %v1476_v8 = vadd.f32 %v1475_v40, %v1474_v19 }
 0x4c3   : > { %v1491_v31 = vrot.slane %v1460_v20, 4  ;;  %v1533_v21 = vrot.slane %v1467_v39, 4  ;;  %v1487_v14 = vrot.slane %v1486_v37, 2  ;;  %v1529_v45 = vrot.slane %v1528_v2, 2 }
 0x4c4   : > { %v1400_v12 = vpop.permute.xlu1 %1399  ;;  %v1435_v44 = vpop.permute.xlu0 %1434  ;;  %v1483_v25 = vrot.slane %v1482_v55, 1  ;;  %v1477_v5 = vrot.slane %v1476_v8, 1 }
 0x4c5   : > { %v1492_v47 = vadd.f32 %v1491_v31, %v1460_v20  ;;  %v1461_v63 = vmul.f32 %v1400_v12, %v2594_v42  ;;  %v1468_v18 = vmul.f32 %v1435_v44, %v2617_v49  ;;  %v1534_v7 = vadd.f32 %v1533_v21, %v1467_v39 }
 0x4c6   : > { %v1488_v58 = vadd.f32 %v1487_v14, %v1486_v37  ;;  %v1530_v54 = vadd.f32 %v1529_v45, %v1528_v2  ;;  %v2961_v59 = vadd.f32 %v1483_v25, %v1482_v55  ;;  %v1478_v22 = vadd.f32 %v1477_v5, %v1476_v8  ;;  %v2075_v55 = vld [vmem:[%s2560_s14 + $0x38] sm:$0xff] }
 0x4c7   : > { %v1493_v61 = vrot.slane %v1492_v47, 2  ;;  %v1497_v41 = vrot.slane %v1461_v63, 4  ;;  %v1539_v6 = vrot.slane %v1468_v18, 4  ;;  %v1535_v27 = vrot.slane %v1534_v7, 2  ;;  %v2076_v45 = vld [vmem:[%s2560_s14 + $0x78] sm:$0xff] }
 0x4c8   : > { %v1405_v48 = vpop.permute.xlu1 %1404  ;;  %v1440_v53 = vpop.permute.xlu0 %1439  ;;  %v1531_v4 = vrot.slane %v1530_v54, 1 }
 0x4c9   : > { %v1462_v24 = vmul.f32 %v1405_v48, %v2599_v43  ;;  %v1469_v13 = vmul.f32 %v1440_v53, %v2620_v50  ;;  %v1540_v33 = vadd.f32 %v1539_v6, %v1468_v18  ;;  %v1494_v49 = vadd.f32 %v1493_v61, %v1492_v47 }
 0x4ca   : > { %v1498_v26 = vadd.f32 %v1497_v41, %v1461_v63  ;;  %v1489_v50 = vrot.slane %v1488_v58, 1  ;;  %v1536_v60 = vadd.f32 %v1535_v27, %v1534_v7  ;;  %v1532_v39 = vadd.f32 %v1531_v4, %v1530_v54 }
 0x4cb   : > { %v1503_v56 = vrot.slane %v1462_v24, 4  ;;  %v1545_v42 = vrot.slane %v1469_v13, 4  ;;  %v1541_v57 = vrot.slane %v1540_v33, 2  ;;  %v1495_v1 = vrot.slane %v1494_v49, 1 }
 0x4cc   : > { %v1420_v9 = vpop.permute.xlu1 %1419  ;;  %v1445_v29 = vpop.permute.xlu0 %1444  ;;  %v1499_v34 = vrot.slane %v1498_v26, 2  ;;  %v1537_v23 = vrot.slane %v1536_v60, 1 }
 0x4cd   : > { %v1504_v35 = vadd.f32 %v1503_v56, %v1462_v24  ;;  %v1546_v15 = vadd.f32 %v1545_v42, %v1469_v13  ;;  %v1465_v0 = vmul.f32 %v1420_v9, %v2605_v46  ;;  %v1470_v43 = vmul.f32 %v1445_v29, %v2625_v51 }
 0x4ce   : > { %v1490_v51 = vadd.f32 %v1489_v50, %v1488_v58  ;;  %v1542_v10 = vadd.f32 %v1541_v57, %v1540_v33  ;;  %v1496_v44 = vadd.f32 %v1495_v1, %v1494_v49  ;;  %v1500_v40 = vadd.f32 %v1499_v34, %v1498_v26 }
 0x4cf   : > { %v1547_v28 = vrot.slane %v1546_v15, 2  ;;  %v1521_v3 = vrot.slane %v1465_v0, 4  ;;  %v1551_v30 = vrot.slane %v1470_v43, 4  ;;  %v1505_v32 = vrot.slane %v1504_v35, 2 }
 0x4d0   : > { %v1410_v17 = vpop.permute.xlu1 %1409  ;;  %v1450_v16 = vpop.permute.xlu0 %1449  ;;  %v1543_v7 = vrot.slane %v1542_v10, 1  ;;  %v1538_v58 = vadd.f32 %v1537_v23, %v1536_v60  ;;  %v1501_v25 = vrot.slane %v1500_v40, 1 }
 0x4d1   : > { %v1522_v62 = vadd.f32 %v1521_v3, %v1465_v0  ;;  %v1552_v46 = vadd.f32 %v1551_v30, %v1470_v43  ;;  %v1463_v38 = vmul.f32 %v2074_v11, %v1410_v17  ;;  %v1471_v36 = vmul.f32 %v1450_v16, %v2628_v52 }
 0x4d2   : > { %v1548_v19 = vadd.f32 %v1547_v28, %v1546_v15  ;;  %v1506_v14 = vadd.f32 %v1505_v32, %v1504_v35  ;;  %v1544_v26 = vadd.f32 %v1543_v7, %v1542_v10  ;;  %v1502_v50 = vadd.f32 %v1501_v25, %v1500_v40 }
 0x4d3   : > { %v1523_v37 = vrot.slane %v1522_v62, 2  ;;  %v1553_v20 = vrot.slane %v1552_v46, 2  ;;  %v1509_v2 = vrot.slane %v1463_v38, 4  ;;  %v1557_v31 = vrot.slane %v1471_v36, 4 }
 0x4d4   : > { %v1415_v21 = vpop.permute.xlu1 %1414  ;;  %v1455_v12 = vpop.permute.xlu0 %1454  ;;  %v1549_v41 = vrot.slane %v1548_v19, 1  ;;  %v1507_v33 = vrot.slane %v1506_v14, 1  ;;  %v1585_v3 = vsel %vm967_vm1, %v2961_v59, %v1478_v22 }
 0x4d5   : > { %v1524_v47 = vadd.f32 %v1523_v37, %v1522_v62  ;;  %v1510_v63 = vadd.f32 %v1509_v2, %v1463_v38  ;;  %v1558_v18 = vadd.f32 %v1557_v31, %v1471_v36  ;;  %v1464_v52 = vmul.f32 %v2075_v55, %v1415_v21 }
 0x4d6   : > { %v1472_v61 = vmul.f32 %v2076_v45, %v1455_v12  ;;  %v1554_v48 = vadd.f32 %v1553_v20, %v1552_v46  ;;  %v1550_v9 = vadd.f32 %v1549_v41, %v1548_v19  ;;  %v1508_v30 = vadd.f32 %v1507_v33, %v1506_v14 }
 0x4d7   : > { %v1525_v6 = vrot.slane %v1524_v47, 1  ;;  %v1511_v53 = vrot.slane %v1510_v63, 2  ;;  %v1559_v24 = vrot.slane %v1558_v18, 2  ;;  %v1515_v13 = vrot.slane %v1464_v52, 4 }
 0x4d8   : > { %v1563_v8 = vrot.slane %v1472_v61, 4  ;;  %v1555_v35 = vrot.slane %v1554_v48, 1  ;;  %v1586_v60 = vsel %vm969_vm2, %v1490_v51, %v1585_v3 }
 0x4d9   : > { %v1526_v56 = vadd.f32 %v1525_v6, %v1524_v47  ;;  %v1512_v42 = vadd.f32 %v1511_v53, %v1510_v63  ;;  %v1560_v54 = vadd.f32 %v1559_v24, %v1558_v18  ;;  %v1516_v49 = vadd.f32 %v1515_v13, %v1464_v52 }
 0x4da   : > { %v1564_v27 = vadd.f32 %v1563_v8, %v1472_v61  ;;  %v1556_v17 = vadd.f32 %v1555_v35, %v1554_v48  ;;  %v1587_v32 = vsel %vm971_vm3, %v1496_v44, %v1586_v60 }
 0x4db   : > { %v1592_v29 = vsel %vm967_vm1, %v1532_v39, %v1526_v56  ;;  %v1513_v0 = vrot.slane %v1512_v42, 1  ;;  %v1561_v43 = vrot.slane %v1560_v54, 1  ;;  %v1517_v5 = vrot.slane %v1516_v49, 2 }
 0x4dc   : > { %v1593_v15 = vsel %vm969_vm2, %v1538_v58, %v1592_v29  ;;  %v1565_v28 = vrot.slane %v1564_v27, 2  ;;  %v1588_v59 = vsel %vm973_vm4, %v1502_v50, %v1587_v32 }
 0x4dd   : > { %v1594_v57 = vsel %vm971_vm3, %v1544_v26, %v1593_v15  ;;  %v1518_v1 = vadd.f32 %v1517_v5, %v1516_v49  ;;  %v1514_v16 = vadd.f32 %v1513_v0, %v1512_v42  ;;  %v1562_v62 = vadd.f32 %v1561_v43, %v1560_v54 }
 0x4de   : > { %v1595_v4 = vsel %vm973_vm4, %v1550_v9, %v1594_v57  ;;  %v1566_v34 = vadd.f32 %v1565_v28, %v1564_v27  ;;  %v1589_v51 = vsel %vm975_vm5, %v1508_v30, %v1588_v59 }
 0x4df   : > { %v1519_v46 = vrot.slane %v1518_v1, 1  ;;  %v1596_v22 = vsel %vm975_vm5, %v1556_v17, %v1595_v4  ;;  %v1590_v36 = vsel %vm977_vm6, %v1514_v16, %v1589_v51 }
 0x4e0   : > { %v1567_v11 = vrot.slane %v1566_v34, 1  ;;  %v1597_v19 = vsel %vm977_vm6, %v1562_v62, %v1596_v22 }
 0x4e1   : > { %v1520_v38 = vadd.f32 %v1519_v46, %v1518_v1 }
 0x4e2   : > { %v1568_v10 = vadd.f32 %v1567_v11, %v1566_v34 }
 0x4e3   : > { %v1591_v37 = vsel %vm979_vm7, %v1520_v38, %v1590_v36 }
 0x4e4   : > { %1601 = vst [vmem:[%s338_s17] sm:$0xff] %v1591_v37  ;;  %v1598_v20 = vsel %vm979_vm7, %v1568_v10, %v1597_v19 }
 0x4e5   : > { %1602 = vst [vmem:[%s338_s17 + $0x8] sm:$0xff] %v1598_v20 }
 0x4e6   : > { %2206 = shalt.err (!%p2203_p7)
}
 0x4e7   : > { %s2207_s0 = scalar_lea.hbm %s2985_s25, 256  ;;  %s2211_s14 = scalar_lea.hbm %s3040_s6, 512 }
 0x4e8   : > { %p2208_p9 = scmp.ne.s32.totalorder %s2985_s25, %s2207_s0  ;;  %p2212_p11 = scmp.lt.u32.totalorder %s2985_s25, %s3040_s6 }
 0x4e9   : > { %p2213_p2 = scmp.lt.u32.totalorder %s2211_s14, %s2207_s0  ;;  %p2215_p1 = scmp.lt.u32.totalorder %s2207_s0, %s2985_s25 }
 0x4ea   : > { %p2209_p0 = pnand %p2208_p9, %p3070_p13 }
 0x4eb   : > { %p2214_p12 = por %p2213_p2, %p2212_p11 }
 0x4ec   : > { %p2210_p8 = pneg %p2209_p0 }
 0x4ed   : > { %p2216_p6 = por %p2215_p1, %p2214_p12 }
 0x4ef   : > { %p2217_p10 = pnand %p2216_p6, %p2210_p8 }
 0x4f1   : > { %2220 = shalt.err (!%p2217_p10)
}
 0x4f2   : > { %s2282_s13 = smov 128   ;;  %s2283_s16 = smov 8  }
 0x4f3   : > { %1938 = dma.vmem_to_hbm [thread:$0]  (%p3070_p13), %s2987_s7, 256, %s2985_s25, %s1604_s10, %s2282_s13, %s2282_s13, %s2283_s16  }
 0x4f4 PF: > { %s1632_s12 = sand.u32 1, %s2259_s21   ;;  %p3071_p4 = scmp.ne.s32.totalorder %s3052_s28, 0 }
 0x4f5   : > { %p3072_p5 = scmp.ge.s32.totalorder %s2271_s24, 2  ;;  %s1633_s17 = scalar_lea.sflag [#allocation4], %s1632_s12 }
 0x4f7   : > { %p1955_p3 = pnand %p3072_p5, %p3071_p4 }
 0x4f9   : > { %2254 = dma.done.wait (!%p1955_p3), %s1633_s17, 256  }
 0x4fa   : > { %2256 = vsyncadd (!%p1955_p3), %s1633_s17, 4294967040  ;;  %s3073_s2 = sld [smem:[#allocation16_spill]]  ;;  %p23_p7 = scmp.ge.s32.totalorder %s2435_s8, 4  }
 0x4fb   : > { %s3074_s21 = smov %s2263_s22  ;;  %s3075_s22 = smov %s2267_s23 }
 0x4fc   : > { %s3077_s24 = smov %s2435_s8  ;;  %25 = sbr.rel (!%p23_p7) target bundleno = 12 (0xc), region = 110 }
 0x500   : > { %s3076_s23 = smov %s3073_s2 }
 0x503   :  { %1638 = vsyncpa [#allocation3], 1 }
 0x504   :  { %1640 = vsyncpa [#allocation3 + $0x1], 1 }
 0x505   :  { %1641 = vsyncpa [#allocation6], 1 }
 0x506   :  { %1643 = vsyncpa [#allocation6 + $0x1], 1 }
 0x507   :  { %1644 = vsyncpa [#allocation9], 1 }
 0x508   :  { %1645 = vsyncpa [#allocation4], 1 }
 0x509   :  { %1647 = vsyncpa [#allocation4 + $0x1], 1 }

</bundles_post_ra>
